<compile_context>
chip_gen: v5e
topology: v5e:2x2
jax: 0.10.0
libtpu: 0.0.40
codegen_flags: <defaults>
</compile_context>

<pallas_src>
import jax
import jax.numpy as jnp
from jax.experimental import pallas as pl
from jax.experimental.pallas import tpu as pltpu

# ------------------------- model hyper-parameters (small) -------------------------
BATCH = 8
IN_CHANNELS = 16          # must be even
HIDDEN_DIM = 32
HIDDEN_DEPTH = 2
N_FLOWS = 4
C2 = IN_CHANNELS // 2
N_MLPS = 2 * N_FLOWS      # two additive coupling nets (t0, t1) per flow block
LEAKY_SLOPE = 0.01        # nn.LeakyReLU default

C, H, D = IN_CHANNELS, HIDDEN_DIM, HIDDEN_DEPTH
SLOTS = 2 * (D + 1)                    # bias slots per block: b0first, bh0*D, bfold, bh1*D
BPERM_OFF = N_FLOWS * SLOTS * H        # lane offset of the folded output bias in the bias slab
BIAS_LANES = BPERM_OFF + max(N_FLOWS * C, 128)   # 768 + 128 = 896 (multiple of 128)
Q_LANES = max(N_FLOWS * C, 128)                  # 128


def _leaky(a):
    return jnp.where(a > 0, a, LEAKY_SLOPE * a)


# ------------------------------------ kernel ---------------------------------------
def nice_flow_kernel(x_ref, wfpad_ref, wh_ref, wfc_ref, wlp_ref, q_ref, b_ref, out_ref):
    """Fused forward of all N_FLOWS blocks (additive double coupling -> shuffle).

    Lane-dense packed slabs (built once, offline, in pack_params):
      wfpad_ref (C, 2*N_FLOWS*H) bf16  zero-padded first-layer weights:
                                       cols [k*H]      -> wf0_k on rows :C2
                                       cols [(N+k)*H]  -> wf1_k on rows C2:
      wh_ref    (D*H, N_MLPS*H)  bf16  hidden weights, rows d*H, cols m*H
      wfc_ref   (H, 2*N_FLOWS*H) bf16  cols [k*H]     -> Wfold_k  = wl0_k @ wf1_k
                                       cols [(N+k)*H] -> Wcross_k = WL1P_k[:, :C2] @ wf0_{k+1}
      wlp_ref   (H, 2*N_FLOWS*C) bf16  cols [2k*C]    -> W0LP_k = wl0_k @ P_k[:C2]
                                       cols [(2k+1)*C]-> WL1P_k = wl1_k @ P_k[C2:]
      q_ref     (C, 128)         f32   cols [k*C] -> Q_k (row-swapped permutation matrix)
      b_ref     (B, 896)         f32   pre-broadcast biases; slot j of block k at (k*SLOTS+j)*H,
                                       folded output bias (width C) at BPERM_OFF + k*C
    """
    f32 = jnp.float32

    def dot_bf16(a, w):
        # bf16 MXU operands, f32 accumulate; the (8,32) activation casts are trivial.
        return jnp.dot(a.astype(jnp.bfloat16), w, preferred_element_type=f32)

    def bias(k, j):                                       # (B, H) pre-broadcast bias slice
        c0 = (k * SLOTS + j) * H
        return b_ref[:, c0:c0 + H]

    def hidden(pre, m, k, j0):                            # LeakyReLU + D hidden layers
        a = _leaky(pre)
        for d in range(D):
            w = wh_ref[d * H:(d + 1) * H, m * H:(m + 1) * H]
            a = _leaky(dot_bf16(a, w) + bias(k, j0 + d))
        return a

    x = x_ref[...]                                        # (B, C) f32

    # block 0's t0 pre-activation (wf0 is zero-padded to (C, H): no activation slicing)
    h0_pre = dot_bf16(x, wfpad_ref[:, 0:H]) + bias(0, 0)

    for k in range(N_FLOWS):                              # fully unrolled: whole flow, one call
        m0, m1 = 2 * k, 2 * k + 1

        # ---- terms needing only the block input: off the dependent-dot chain ----
        #   xb @ wf1 + (b0_last @ wf1 + b1_first)
        xb_side = (dot_bf16(x, wfpad_ref[:, (N_FLOWS + k) * H:(N_FLOWS + k + 1) * H])
                   + bias(k, D + 1))
        #   xb @ P[:C2] + xa @ P[C2:] + (b0_last @ P[:C2] + b1_last @ P[C2:])
        #   (kept f32: the permutation pass-through of x stays exact)
        perm_part = (jnp.dot(x, q_ref[:, k * C:(k + 1) * C], preferred_element_type=f32)
                     + b_ref[:, BPERM_OFF + k * C:BPERM_OFF + (k + 1) * C])

        # ---- t0 hidden stack (chain dots) ----
        h0 = hidden(h0_pre, m0, k, 1)

        # ---- t1 stack, t0-last folded into t1-first (chain dots) ----
        h1_pre = dot_bf16(h0, wfc_ref[:, k * H:(k + 1) * H]) + xb_side
        h1 = hidden(h1_pre, m1, k, D + 2)

        # ---- block output: shuffle folded into both last layers, accumulated dot-adds ----
        base = perm_part + dot_bf16(h0, wlp_ref[:, (2 * k) * C:(2 * k + 1) * C])
        x = base + dot_bf16(h1, wlp_ref[:, (2 * k + 1) * C:(2 * k + 2) * C])

        # ---- cross-block fold: next block's t0 pre-activation (only h1-dot is on-chain) ----
        if k + 1 < N_FLOWS:
            h0_pre = (dot_bf16(base, wfpad_ref[:, (k + 1) * H:(k + 2) * H])
                      + dot_bf16(h1, wfc_ref[:, (N_FLOWS + k) * H:(N_FLOWS + k + 1) * H])
                      + bias(k + 1, 0))

    out_ref[...] = x


# ------------------------------------ wrapper ---------------------------------------
def nice_flow_forward(x_nchw, packed):
    """UnconditionalNICEFlow.forward(x, reverse=False) -> (out, logdet)."""
    b, c, hh, ww = x_nchw.shape
    assert c == IN_CHANNELS and hh == 1 and ww == 1 and b == BATCH
    x = x_nchw.reshape(b, c)

    inputs = (x, packed["wfpad"], packed["wh"], packed["wfc"], packed["wlp"],
              packed["q"], packed["b"])
    vmem = pl.BlockSpec(memory_space=pltpu.MemorySpace.VMEM)
    # Grid-less single call: whole problem < 100 KiB of VMEM.  For real workloads with
    # large batches, add a leading "parallel" batch grid axis (engages v7x's 2nd TC).
    out = pl.pallas_call(
        nice_flow_kernel,
        out_shape=jax.ShapeDtypeStruct((b, c), jnp.float32),
        in_specs=[vmem] * len(inputs),
        out_specs=vmem,
    )(*inputs)

    # Purely additive coupling + permutation shuffle -> logdet == 0 exactly.
    logdet = jnp.zeros((b,), jnp.float32)
    return out.reshape(b, c, 1, 1), logdet


# ------------------------------- parameters / packing --------------------------------
def init_raw_params(key):
    """Raw per-module parameters, mirroring the PyTorch layout."""
    ks = jax.random.split(key, 7)
    w_first = 0.05 * jax.random.normal(ks[0], (N_MLPS, C2, H), jnp.float32)
    b_first = 0.05 * jax.random.normal(ks[1], (N_MLPS, H), jnp.float32)
    w_hidden = 0.05 * jax.random.normal(ks[2], (N_MLPS, D, H, H), jnp.float32)
    b_hidden = 0.05 * jax.random.normal(ks[3], (N_MLPS, D, H), jnp.float32)
    w_last = 0.05 * jax.random.normal(ks[4], (N_MLPS, H, C2), jnp.float32)
    b_last = 0.05 * jax.random.normal(ks[5], (N_MLPS, C2), jnp.float32)
    perm_keys = jax.random.split(ks[6], N_FLOWS)
    perm_idx = jnp.stack([jax.random.permutation(pk, C) for pk in perm_keys])
    return dict(w_first=w_first, b_first=b_first, w_hidden=w_hidden, b_hidden=b_hidden,
                w_last=w_last, b_last=b_last, perm_idx=perm_idx)


def pack_params(raw):
    """One-time offline packing: algebraic folds + lane-dense slabs + bf16 weight cast."""
    assert IN_CHANNELS % 2 == 0
    wdt = jnp.bfloat16
    wf, bfst = raw["w_first"], raw["b_first"]
    wh, bh = raw["w_hidden"], raw["b_hidden"]
    wl, bl = raw["w_last"], raw["b_last"]

    wfpad = jnp.zeros((C, 2 * N_FLOWS * H), jnp.float32)
    wh_slab = jnp.zeros((D * H, N_MLPS * H), jnp.float32)
    wfc = jnp.zeros((H, 2 * N_FLOWS * H), jnp.float32)
    wlp = jnp.zeros((H, 2 * N_FLOWS * C), jnp.float32)
    q = jnp.zeros((C, Q_LANES), jnp.float32)
    bslab = jnp.zeros((BATCH, BIAS_LANES), jnp.float32)

    def bput(arr, k, j, v):                  # pre-broadcast (H,) bias into slot j of block k
        c0 = (k * SLOTS + j) * H
        return arr.at[:, c0:c0 + H].set(jnp.broadcast_to(v, (BATCH, H)))

    for k in range(N_FLOWS):
        m0, m1 = 2 * k, 2 * k + 1
        perm = raw["perm_idx"][k]
        # x[:, perm] == x @ P  with  P[perm[i], i] = 1
        P = jnp.zeros((C, C), jnp.float32).at[perm, jnp.arange(C)].set(1.0)
        Ptop, Pbot = P[:C2, :], P[C2:, :]

        # Q: x @ Q == xb @ Ptop + xa @ Pbot  (the permutation pass-through of the block input)
        q = q.at[:, k * C:(k + 1) * C].set(jnp.concatenate([Pbot, Ptop], axis=0))

        # zero-padded first-layer weights (so the kernel never lane-slices activations)
        wfpad = wfpad.at[:C2, k * H:(k + 1) * H].set(wf[m0])
        wfpad = wfpad.at[C2:, (N_FLOWS + k) * H:(N_FLOWS + k + 1) * H].set(wf[m1])

        # hidden weights
        for d in range(D):
            wh_slab = wh_slab.at[d * H:(d + 1) * H, m0 * H:(m0 + 1) * H].set(wh[m0, d])
            wh_slab = wh_slab.at[d * H:(d + 1) * H, m1 * H:(m1 + 1) * H].set(wh[m1, d])

        # folds: t0-last -> t1-first, shuffle -> both last layers, t1-last -> next t0-first
        W0LP = wl[m0] @ Ptop                  # (H, C)
        WL1P = wl[m1] @ Pbot                  # (H, C)
        wfc = wfc.at[:, k * H:(k + 1) * H].set(wl[m0] @ wf[m1])
        wlp = wlp.at[:, (2 * k) * C:(2 * k + 1) * C].set(W0LP)
        wlp = wlp.at[:, (2 * k + 1) * C:(2 * k + 2) * C].set(WL1P)
        if k + 1 < N_FLOWS:
            wfc = wfc.at[:, (N_FLOWS + k) * H:(N_FLOWS + k + 1) * H].set(
                WL1P[:, :C2] @ wf[2 * (k + 1)])

        # biases (pre-broadcast to BATCH rows)
        bslab = bput(bslab, k, 0, bfst[m0])
        for d in range(D):
            bslab = bput(bslab, k, 1 + d, bh[m0, d])
            bslab = bput(bslab, k, D + 2 + d, bh[m1, d])
        bslab = bput(bslab, k, D + 1, bl[m0] @ wf[m1] + bfst[m1])          # folded t1-first bias
        bslab = bslab.at[:, BPERM_OFF + k * C:BPERM_OFF + (k + 1) * C].set(
            jnp.broadcast_to(bl[m0] @ Ptop + bl[m1] @ Pbot, (BATCH, C)))   # folded output bias

    return dict(wfpad=wfpad.astype(wdt), wh=wh_slab.astype(wdt), wfc=wfc.astype(wdt),
                wlp=wlp.astype(wdt), q=q, b=bslab)


# --------------------------------- pure-JAX reference --------------------------------
def _mlp_ref(v, wf, bf, wh, bh, wl, bl):
    a = v @ wf + bf
    a = jnp.where(a > 0, a, LEAKY_SLOPE * a)
    for d in range(D):
        a = a @ wh[d] + bh[d]
        a = jnp.where(a > 0, a, LEAKY_SLOPE * a)
    return a @ wl + bl


def nice_flow_reference(x_nchw, raw):
    """Literal translation of the PyTorch forward (reverse=False), with raw weights."""
    b, c, _, _ = x_nchw.shape
    x = x_nchw.reshape(b, c)
    for k in range(N_FLOWS):
        # NICEDoubleVectorCouplingBlock
        for i in range(2):
            m = 2 * k + i
            if i % 2 != 0:
                h0, h1 = jnp.split(x, 2, axis=1)
                x = jnp.concatenate([h1, h0], axis=1)
            ca, cb = jnp.split(x, 2, axis=1)
            x_ = cb + _mlp_ref(ca, raw["w_first"][m], raw["b_first"][m],
                               raw["w_hidden"][m], raw["b_hidden"][m],
                               raw["w_last"][m], raw["b_last"][m])
            x = jnp.concatenate([ca, x_], axis=1)
        # Shuffle
        x = x[:, raw["perm_idx"][k]]
    logdet = jnp.zeros((b,), jnp.float32)
    return x.reshape(b, c, 1, 1), logdet


# --------------------------------------- main ----------------------------------------
if __name__ == "__main__":
    key = jax.random.PRNGKey(0)
    k_x, k_p = jax.random.split(key)
    raw = init_raw_params(k_p)
    packed = pack_params(raw)

    x = jax.random.normal(k_x, (BATCH, IN_CHANNELS, 1, 1), jnp.float32)

    fwd = jax.jit(nice_flow_forward)
    out, logdet = fwd(x, packed)
    out = jax.block_until_ready(out)
    logdet = jax.block_until_ready(logdet)

    ref_out, ref_logdet = nice_flow_reference(x, raw)
    assert out.shape == (BATCH, IN_CHANNELS, 1, 1)
    assert logdet.shape == (BATCH,)
    # Coupling-path MXU operands are bf16 (f32 accumulate); the f32 permutation
    # pass-through keeps the error ~1e-3, well inside this tolerance.
    assert jnp.allclose(out, ref_out, rtol=2e-2, atol=2e-2), "mismatch vs reference"
    assert jnp.allclose(logdet, ref_logdet), "logdet mismatch"

    print("KERNEL_OK")
</pallas_src>

<mosaic_0001>
module attributes {stable_mosaic.version = 11 : i64} {
  func.func @nice_flow_kernel(%arg0: memref<8x16xf32, #tpu.memory_space<vmem>>, %arg1: memref<16x256xbf16, #tpu.memory_space<vmem>>, %arg2: memref<64x256xbf16, #tpu.memory_space<vmem>>, %arg3: memref<32x256xbf16, #tpu.memory_space<vmem>>, %arg4: memref<32x128xbf16, #tpu.memory_space<vmem>>, %arg5: memref<16x128xf32, #tpu.memory_space<vmem>>, %arg6: memref<8x896xf32, #tpu.memory_space<vmem>>, %arg7: memref<8x16xf32, #tpu.memory_space<vmem>>) attributes {dimension_semantics = [], scalar_prefetch = 0 : i64, scratch_operands = 0 : i64, tpu.core_type = #tpu.core_type<tc>} {
    %c0 = arith.constant 0 : index
    %c0_0 = arith.constant 0 : index
    %0 = vector.load %arg0[%c0, %c0_0] : memref<8x16xf32, #tpu.memory_space<vmem>>, vector<8x16xf32>
    %c0_1 = arith.constant 0 : index
    %c0_2 = arith.constant 0 : index
    %1 = vector.load %arg1[%c0_1, %c0_2] : memref<16x256xbf16, #tpu.memory_space<vmem>>, vector<16x32xbf16>
    %2 = arith.truncf %0 : vector<8x16xf32> to vector<8x16xbf16>
    %cst = arith.constant dense<0.000000e+00> : vector<8x32xf32>
    %3 = tpu.matmul %2, %1, %cst {dimension_numbers = #tpu.dot_dimension_numbers<[1], [0], [0], [1], [0, 0, 1, 1], [], []>} : vector<8x16xbf16>, vector<16x32xbf16>, vector<8x32xf32> -> vector<8x32xf32>
    %c0_3 = arith.constant 0 : index
    %c0_4 = arith.constant 0 : index
    %4 = vector.load %arg6[%c0_3, %c0_4] : memref<8x896xf32, #tpu.memory_space<vmem>>, vector<8x32xf32>
    %5 = arith.addf %3, %4 : vector<8x32xf32>
    %c0_5 = arith.constant 0 : index
    %c128 = arith.constant 128 : index
    %6 = vector.load %arg1[%c0_5, %c128] : memref<16x256xbf16, #tpu.memory_space<vmem>>, vector<16x32xbf16>
    %7 = arith.truncf %0 : vector<8x16xf32> to vector<8x16xbf16>
    %cst_6 = arith.constant dense<0.000000e+00> : vector<8x32xf32>
    %8 = tpu.matmul %7, %6, %cst_6 {dimension_numbers = #tpu.dot_dimension_numbers<[1], [0], [0], [1], [0, 0, 1, 1], [], []>} : vector<8x16xbf16>, vector<16x32xbf16>, vector<8x32xf32> -> vector<8x32xf32>
    %c0_7 = arith.constant 0 : index
    %c96 = arith.constant 96 : index
    %9 = vector.load %arg6[%c0_7, %c96] : memref<8x896xf32, #tpu.memory_space<vmem>>, vector<8x32xf32>
    %10 = arith.addf %8, %9 : vector<8x32xf32>
    %c0_8 = arith.constant 0 : index
    %c0_9 = arith.constant 0 : index
    %11 = vector.load %arg5[%c0_8, %c0_9] : memref<16x128xf32, #tpu.memory_space<vmem>>, vector<16x16xf32>
    %cst_10 = arith.constant dense<0.000000e+00> : vector<8x16xf32>
    %12 = tpu.matmul %0, %11, %cst_10 {dimension_numbers = #tpu.dot_dimension_numbers<[1], [0], [0], [1], [0, 0, 1, 1], [], []>} : vector<8x16xf32>, vector<16x16xf32>, vector<8x16xf32> -> vector<8x16xf32>
    %c0_11 = arith.constant 0 : index
    %c768 = arith.constant 768 : index
    %13 = vector.load %arg6[%c0_11, %c768] : memref<8x896xf32, #tpu.memory_space<vmem>>, vector<8x16xf32>
    %14 = arith.addf %12, %13 : vector<8x16xf32>
    %cst_12 = arith.constant 0.000000e+00 : f32
    %15 = vector.broadcast %cst_12 : f32 to vector<8x32xf32>
    %16 = arith.cmpf ogt, %5, %15 : vector<8x32xf32>
    %cst_13 = arith.constant 0.00999999977 : f32
    %17 = vector.broadcast %cst_13 : f32 to vector<8x32xf32>
    %18 = arith.mulf %17, %5 : vector<8x32xf32>
    %19 = arith.select %16, %5, %18 : vector<8x32xi1>, vector<8x32xf32>
    %c0_14 = arith.constant 0 : index
    %c0_15 = arith.constant 0 : index
    %20 = vector.load %arg2[%c0_14, %c0_15] : memref<64x256xbf16, #tpu.memory_space<vmem>>, vector<32x32xbf16>
    %21 = arith.truncf %19 : vector<8x32xf32> to vector<8x32xbf16>
    %cst_16 = arith.constant dense<0.000000e+00> : vector<8x32xf32>
    %22 = tpu.matmul %21, %20, %cst_16 {dimension_numbers = #tpu.dot_dimension_numbers<[1], [0], [0], [1], [0, 0, 1, 1], [], []>} : vector<8x32xbf16>, vector<32x32xbf16>, vector<8x32xf32> -> vector<8x32xf32>
    %c0_17 = arith.constant 0 : index
    %c32 = arith.constant 32 : index
    %23 = vector.load %arg6[%c0_17, %c32] : memref<8x896xf32, #tpu.memory_space<vmem>>, vector<8x32xf32>
    %24 = arith.addf %22, %23 : vector<8x32xf32>
    %cst_18 = arith.constant 0.000000e+00 : f32
    %25 = vector.broadcast %cst_18 : f32 to vector<8x32xf32>
    %26 = arith.cmpf ogt, %24, %25 : vector<8x32xf32>
    %cst_19 = arith.constant 0.00999999977 : f32
    %27 = vector.broadcast %cst_19 : f32 to vector<8x32xf32>
    %28 = arith.mulf %27, %24 : vector<8x32xf32>
    %29 = arith.select %26, %24, %28 : vector<8x32xi1>, vector<8x32xf32>
    %c32_20 = arith.constant 32 : index
    %c0_21 = arith.constant 0 : index
    %30 = vector.load %arg2[%c32_20, %c0_21] : memref<64x256xbf16, #tpu.memory_space<vmem>>, vector<32x32xbf16>
    %31 = arith.truncf %29 : vector<8x32xf32> to vector<8x32xbf16>
    %cst_22 = arith.constant dense<0.000000e+00> : vector<8x32xf32>
    %32 = tpu.matmul %31, %30, %cst_22 {dimension_numbers = #tpu.dot_dimension_numbers<[1], [0], [0], [1], [0, 0, 1, 1], [], []>} : vector<8x32xbf16>, vector<32x32xbf16>, vector<8x32xf32> -> vector<8x32xf32>
    %c0_23 = arith.constant 0 : index
    %c64 = arith.constant 64 : index
    %33 = vector.load %arg6[%c0_23, %c64] : memref<8x896xf32, #tpu.memory_space<vmem>>, vector<8x32xf32>
    %34 = arith.addf %32, %33 : vector<8x32xf32>
    %cst_24 = arith.constant 0.000000e+00 : f32
    %35 = vector.broadcast %cst_24 : f32 to vector<8x32xf32>
    %36 = arith.cmpf ogt, %34, %35 : vector<8x32xf32>
    %cst_25 = arith.constant 0.00999999977 : f32
    %37 = vector.broadcast %cst_25 : f32 to vector<8x32xf32>
    %38 = arith.mulf %37, %34 : vector<8x32xf32>
    %39 = arith.select %36, %34, %38 : vector<8x32xi1>, vector<8x32xf32>
    %c0_26 = arith.constant 0 : index
    %c0_27 = arith.constant 0 : index
    %40 = vector.load %arg3[%c0_26, %c0_27] : memref<32x256xbf16, #tpu.memory_space<vmem>>, vector<32x32xbf16>
    %41 = arith.truncf %39 : vector<8x32xf32> to vector<8x32xbf16>
    %cst_28 = arith.constant dense<0.000000e+00> : vector<8x32xf32>
    %42 = tpu.matmul %41, %40, %cst_28 {dimension_numbers = #tpu.dot_dimension_numbers<[1], [0], [0], [1], [0, 0, 1, 1], [], []>} : vector<8x32xbf16>, vector<32x32xbf16>, vector<8x32xf32> -> vector<8x32xf32>
    %43 = arith.addf %42, %10 : vector<8x32xf32>
    %cst_29 = arith.constant 0.000000e+00 : f32
    %44 = vector.broadcast %cst_29 : f32 to vector<8x32xf32>
    %45 = arith.cmpf ogt, %43, %44 : vector<8x32xf32>
    %cst_30 = arith.constant 0.00999999977 : f32
    %46 = vector.broadcast %cst_30 : f32 to vector<8x32xf32>
    %47 = arith.mulf %46, %43 : vector<8x32xf32>
    %48 = arith.select %45, %43, %47 : vector<8x32xi1>, vector<8x32xf32>
    %c0_31 = arith.constant 0 : index
    %c32_32 = arith.constant 32 : index
    %49 = vector.load %arg2[%c0_31, %c32_32] : memref<64x256xbf16, #tpu.memory_space<vmem>>, vector<32x32xbf16>
    %50 = arith.truncf %48 : vector<8x32xf32> to vector<8x32xbf16>
    %cst_33 = arith.constant dense<0.000000e+00> : vector<8x32xf32>
    %51 = tpu.matmul %50, %49, %cst_33 {dimension_numbers = #tpu.dot_dimension_numbers<[1], [0], [0], [1], [0, 0, 1, 1], [], []>} : vector<8x32xbf16>, vector<32x32xbf16>, vector<8x32xf32> -> vector<8x32xf32>
    %c0_34 = arith.constant 0 : index
    %c128_35 = arith.constant 128 : index
    %52 = vector.load %arg6[%c0_34, %c128_35] : memref<8x896xf32, #tpu.memory_space<vmem>>, vector<8x32xf32>
    %53 = arith.addf %51, %52 : vector<8x32xf32>
    %cst_36 = arith.constant 0.000000e+00 : f32
    %54 = vector.broadcast %cst_36 : f32 to vector<8x32xf32>
    %55 = arith.cmpf ogt, %53, %54 : vector<8x32xf32>
    %cst_37 = arith.constant 0.00999999977 : f32
    %56 = vector.broadcast %cst_37 : f32 to vector<8x32xf32>
    %57 = arith.mulf %56, %53 : vector<8x32xf32>
    %58 = arith.select %55, %53, %57 : vector<8x32xi1>, vector<8x32xf32>
    %c32_38 = arith.constant 32 : index
    %c32_39 = arith.constant 32 : index
    %59 = vector.load %arg2[%c32_38, %c32_39] : memref<64x256xbf16, #tpu.memory_space<vmem>>, vector<32x32xbf16>
    %60 = arith.truncf %58 : vector<8x32xf32> to vector<8x32xbf16>
    %cst_40 = arith.constant dense<0.000000e+00> : vector<8x32xf32>
    %61 = tpu.matmul %60, %59, %cst_40 {dimension_numbers = #tpu.dot_dimension_numbers<[1], [0], [0], [1], [0, 0, 1, 1], [], []>} : vector<8x32xbf16>, vector<32x32xbf16>, vector<8x32xf32> -> vector<8x32xf32>
    %c0_41 = arith.constant 0 : index
    %c160 = arith.constant 160 : index
    %62 = vector.load %arg6[%c0_41, %c160] : memref<8x896xf32, #tpu.memory_space<vmem>>, vector<8x32xf32>
    %63 = arith.addf %61, %62 : vector<8x32xf32>
    %cst_42 = arith.constant 0.000000e+00 : f32
    %64 = vector.broadcast %cst_42 : f32 to vector<8x32xf32>
    %65 = arith.cmpf ogt, %63, %64 : vector<8x32xf32>
    %cst_43 = arith.constant 0.00999999977 : f32
    %66 = vector.broadcast %cst_43 : f32 to vector<8x32xf32>
    %67 = arith.mulf %66, %63 : vector<8x32xf32>
    %68 = arith.select %65, %63, %67 : vector<8x32xi1>, vector<8x32xf32>
    %c0_44 = arith.constant 0 : index
    %c0_45 = arith.constant 0 : index
    %69 = vector.load %arg4[%c0_44, %c0_45] : memref<32x128xbf16, #tpu.memory_space<vmem>>, vector<32x16xbf16>
    %70 = arith.truncf %39 : vector<8x32xf32> to vector<8x32xbf16>
    %cst_46 = arith.constant dense<0.000000e+00> : vector<8x16xf32>
    %71 = tpu.matmul %70, %69, %cst_46 {dimension_numbers = #tpu.dot_dimension_numbers<[1], [0], [0], [1], [0, 0, 1, 1], [], []>} : vector<8x32xbf16>, vector<32x16xbf16>, vector<8x16xf32> -> vector<8x16xf32>
    %72 = arith.addf %14, %71 : vector<8x16xf32>
    %c0_47 = arith.constant 0 : index
    %c16 = arith.constant 16 : index
    %73 = vector.load %arg4[%c0_47, %c16] : memref<32x128xbf16, #tpu.memory_space<vmem>>, vector<32x16xbf16>
    %74 = arith.truncf %68 : vector<8x32xf32> to vector<8x32xbf16>
    %cst_48 = arith.constant dense<0.000000e+00> : vector<8x16xf32>
    %75 = tpu.matmul %74, %73, %cst_48 {dimension_numbers = #tpu.dot_dimension_numbers<[1], [0], [0], [1], [0, 0, 1, 1], [], []>} : vector<8x32xbf16>, vector<32x16xbf16>, vector<8x16xf32> -> vector<8x16xf32>
    %76 = arith.addf %72, %75 : vector<8x16xf32>
    %c0_49 = arith.constant 0 : index
    %c32_50 = arith.constant 32 : index
    %77 = vector.load %arg1[%c0_49, %c32_50] : memref<16x256xbf16, #tpu.memory_space<vmem>>, vector<16x32xbf16>
    %78 = arith.truncf %72 : vector<8x16xf32> to vector<8x16xbf16>
    %cst_51 = arith.constant dense<0.000000e+00> : vector<8x32xf32>
    %79 = tpu.matmul %78, %77, %cst_51 {dimension_numbers = #tpu.dot_dimension_numbers<[1], [0], [0], [1], [0, 0, 1, 1], [], []>} : vector<8x16xbf16>, vector<16x32xbf16>, vector<8x32xf32> -> vector<8x32xf32>
    %c0_52 = arith.constant 0 : index
    %c128_53 = arith.constant 128 : index
    %80 = vector.load %arg3[%c0_52, %c128_53] : memref<32x256xbf16, #tpu.memory_space<vmem>>, vector<32x32xbf16>
    %81 = arith.truncf %68 : vector<8x32xf32> to vector<8x32xbf16>
    %cst_54 = arith.constant dense<0.000000e+00> : vector<8x32xf32>
    %82 = tpu.matmul %81, %80, %cst_54 {dimension_numbers = #tpu.dot_dimension_numbers<[1], [0], [0], [1], [0, 0, 1, 1], [], []>} : vector<8x32xbf16>, vector<32x32xbf16>, vector<8x32xf32> -> vector<8x32xf32>
    %83 = arith.addf %79, %82 : vector<8x32xf32>
    %c0_55 = arith.constant 0 : index
    %c192 = arith.constant 192 : index
    %84 = vector.load %arg6[%c0_55, %c192] : memref<8x896xf32, #tpu.memory_space<vmem>>, vector<8x32xf32>
    %85 = arith.addf %83, %84 : vector<8x32xf32>
    %c0_56 = arith.constant 0 : index
    %c160_57 = arith.constant 160 : index
    %86 = vector.load %arg1[%c0_56, %c160_57] : memref<16x256xbf16, #tpu.memory_space<vmem>>, vector<16x32xbf16>
    %87 = arith.truncf %76 : vector<8x16xf32> to vector<8x16xbf16>
    %cst_58 = arith.constant dense<0.000000e+00> : vector<8x32xf32>
    %88 = tpu.matmul %87, %86, %cst_58 {dimension_numbers = #tpu.dot_dimension_numbers<[1], [0], [0], [1], [0, 0, 1, 1], [], []>} : vector<8x16xbf16>, vector<16x32xbf16>, vector<8x32xf32> -> vector<8x32xf32>
    %c0_59 = arith.constant 0 : index
    %c288 = arith.constant 288 : index
    %89 = vector.load %arg6[%c0_59, %c288] : memref<8x896xf32, #tpu.memory_space<vmem>>, vector<8x32xf32>
    %90 = arith.addf %88, %89 : vector<8x32xf32>
    %c0_60 = arith.constant 0 : index
    %c16_61 = arith.constant 16 : index
    %91 = vector.load %arg5[%c0_60, %c16_61] : memref<16x128xf32, #tpu.memory_space<vmem>>, vector<16x16xf32>
    %cst_62 = arith.constant dense<0.000000e+00> : vector<8x16xf32>
    %92 = tpu.matmul %76, %91, %cst_62 {dimension_numbers = #tpu.dot_dimension_numbers<[1], [0], [0], [1], [0, 0, 1, 1], [], []>} : vector<8x16xf32>, vector<16x16xf32>, vector<8x16xf32> -> vector<8x16xf32>
    %c0_63 = arith.constant 0 : index
    %c784 = arith.constant 784 : index
    %93 = vector.load %arg6[%c0_63, %c784] : memref<8x896xf32, #tpu.memory_space<vmem>>, vector<8x16xf32>
    %94 = arith.addf %92, %93 : vector<8x16xf32>
    %cst_64 = arith.constant 0.000000e+00 : f32
    %95 = vector.broadcast %cst_64 : f32 to vector<8x32xf32>
    %96 = arith.cmpf ogt, %85, %95 : vector<8x32xf32>
    %cst_65 = arith.constant 0.00999999977 : f32
    %97 = vector.broadcast %cst_65 : f32 to vector<8x32xf32>
    %98 = arith.mulf %97, %85 : vector<8x32xf32>
    %99 = arith.select %96, %85, %98 : vector<8x32xi1>, vector<8x32xf32>
    %c0_66 = arith.constant 0 : index
    %c64_67 = arith.constant 64 : index
    %100 = vector.load %arg2[%c0_66, %c64_67] : memref<64x256xbf16, #tpu.memory_space<vmem>>, vector<32x32xbf16>
    %101 = arith.truncf %99 : vector<8x32xf32> to vector<8x32xbf16>
    %cst_68 = arith.constant dense<0.000000e+00> : vector<8x32xf32>
    %102 = tpu.matmul %101, %100, %cst_68 {dimension_numbers = #tpu.dot_dimension_numbers<[1], [0], [0], [1], [0, 0, 1, 1], [], []>} : vector<8x32xbf16>, vector<32x32xbf16>, vector<8x32xf32> -> vector<8x32xf32>
    %c0_69 = arith.constant 0 : index
    %c224 = arith.constant 224 : index
    %103 = vector.load %arg6[%c0_69, %c224] : memref<8x896xf32, #tpu.memory_space<vmem>>, vector<8x32xf32>
    %104 = arith.addf %102, %103 : vector<8x32xf32>
    %cst_70 = arith.constant 0.000000e+00 : f32
    %105 = vector.broadcast %cst_70 : f32 to vector<8x32xf32>
    %106 = arith.cmpf ogt, %104, %105 : vector<8x32xf32>
    %cst_71 = arith.constant 0.00999999977 : f32
    %107 = vector.broadcast %cst_71 : f32 to vector<8x32xf32>
    %108 = arith.mulf %107, %104 : vector<8x32xf32>
    %109 = arith.select %106, %104, %108 : vector<8x32xi1>, vector<8x32xf32>
    %c32_72 = arith.constant 32 : index
    %c64_73 = arith.constant 64 : index
    %110 = vector.load %arg2[%c32_72, %c64_73] : memref<64x256xbf16, #tpu.memory_space<vmem>>, vector<32x32xbf16>
    %111 = arith.truncf %109 : vector<8x32xf32> to vector<8x32xbf16>
    %cst_74 = arith.constant dense<0.000000e+00> : vector<8x32xf32>
    %112 = tpu.matmul %111, %110, %cst_74 {dimension_numbers = #tpu.dot_dimension_numbers<[1], [0], [0], [1], [0, 0, 1, 1], [], []>} : vector<8x32xbf16>, vector<32x32xbf16>, vector<8x32xf32> -> vector<8x32xf32>
    %c0_75 = arith.constant 0 : index
    %c256 = arith.constant 256 : index
    %113 = vector.load %arg6[%c0_75, %c256] : memref<8x896xf32, #tpu.memory_space<vmem>>, vector<8x32xf32>
    %114 = arith.addf %112, %113 : vector<8x32xf32>
    %cst_76 = arith.constant 0.000000e+00 : f32
    %115 = vector.broadcast %cst_76 : f32 to vector<8x32xf32>
    %116 = arith.cmpf ogt, %114, %115 : vector<8x32xf32>
    %cst_77 = arith.constant 0.00999999977 : f32
    %117 = vector.broadcast %cst_77 : f32 to vector<8x32xf32>
    %118 = arith.mulf %117, %114 : vector<8x32xf32>
    %119 = arith.select %116, %114, %118 : vector<8x32xi1>, vector<8x32xf32>
    %c0_78 = arith.constant 0 : index
    %c32_79 = arith.constant 32 : index
    %120 = vector.load %arg3[%c0_78, %c32_79] : memref<32x256xbf16, #tpu.memory_space<vmem>>, vector<32x32xbf16>
    %121 = arith.truncf %119 : vector<8x32xf32> to vector<8x32xbf16>
    %cst_80 = arith.constant dense<0.000000e+00> : vector<8x32xf32>
    %122 = tpu.matmul %121, %120, %cst_80 {dimension_numbers = #tpu.dot_dimension_numbers<[1], [0], [0], [1], [0, 0, 1, 1], [], []>} : vector<8x32xbf16>, vector<32x32xbf16>, vector<8x32xf32> -> vector<8x32xf32>
    %123 = arith.addf %122, %90 : vector<8x32xf32>
    %cst_81 = arith.constant 0.000000e+00 : f32
    %124 = vector.broadcast %cst_81 : f32 to vector<8x32xf32>
    %125 = arith.cmpf ogt, %123, %124 : vector<8x32xf32>
    %cst_82 = arith.constant 0.00999999977 : f32
    %126 = vector.broadcast %cst_82 : f32 to vector<8x32xf32>
    %127 = arith.mulf %126, %123 : vector<8x32xf32>
    %128 = arith.select %125, %123, %127 : vector<8x32xi1>, vector<8x32xf32>
    %c0_83 = arith.constant 0 : index
    %c96_84 = arith.constant 96 : index
    %129 = vector.load %arg2[%c0_83, %c96_84] : memref<64x256xbf16, #tpu.memory_space<vmem>>, vector<32x32xbf16>
    %130 = arith.truncf %128 : vector<8x32xf32> to vector<8x32xbf16>
    %cst_85 = arith.constant dense<0.000000e+00> : vector<8x32xf32>
    %131 = tpu.matmul %130, %129, %cst_85 {dimension_numbers = #tpu.dot_dimension_numbers<[1], [0], [0], [1], [0, 0, 1, 1], [], []>} : vector<8x32xbf16>, vector<32x32xbf16>, vector<8x32xf32> -> vector<8x32xf32>
    %c0_86 = arith.constant 0 : index
    %c320 = arith.constant 320 : index
    %132 = vector.load %arg6[%c0_86, %c320] : memref<8x896xf32, #tpu.memory_space<vmem>>, vector<8x32xf32>
    %133 = arith.addf %131, %132 : vector<8x32xf32>
    %cst_87 = arith.constant 0.000000e+00 : f32
    %134 = vector.broadcast %cst_87 : f32 to vector<8x32xf32>
    %135 = arith.cmpf ogt, %133, %134 : vector<8x32xf32>
    %cst_88 = arith.constant 0.00999999977 : f32
    %136 = vector.broadcast %cst_88 : f32 to vector<8x32xf32>
    %137 = arith.mulf %136, %133 : vector<8x32xf32>
    %138 = arith.select %135, %133, %137 : vector<8x32xi1>, vector<8x32xf32>
    %c32_89 = arith.constant 32 : index
    %c96_90 = arith.constant 96 : index
    %139 = vector.load %arg2[%c32_89, %c96_90] : memref<64x256xbf16, #tpu.memory_space<vmem>>, vector<32x32xbf16>
    %140 = arith.truncf %138 : vector<8x32xf32> to vector<8x32xbf16>
    %cst_91 = arith.constant dense<0.000000e+00> : vector<8x32xf32>
    %141 = tpu.matmul %140, %139, %cst_91 {dimension_numbers = #tpu.dot_dimension_numbers<[1], [0], [0], [1], [0, 0, 1, 1], [], []>} : vector<8x32xbf16>, vector<32x32xbf16>, vector<8x32xf32> -> vector<8x32xf32>
    %c0_92 = arith.constant 0 : index
    %c352 = arith.constant 352 : index
    %142 = vector.load %arg6[%c0_92, %c352] : memref<8x896xf32, #tpu.memory_space<vmem>>, vector<8x32xf32>
    %143 = arith.addf %141, %142 : vector<8x32xf32>
    %cst_93 = arith.constant 0.000000e+00 : f32
    %144 = vector.broadcast %cst_93 : f32 to vector<8x32xf32>
    %145 = arith.cmpf ogt, %143, %144 : vector<8x32xf32>
    %cst_94 = arith.constant 0.00999999977 : f32
    %146 = vector.broadcast %cst_94 : f32 to vector<8x32xf32>
    %147 = arith.mulf %146, %143 : vector<8x32xf32>
    %148 = arith.select %145, %143, %147 : vector<8x32xi1>, vector<8x32xf32>
    %c0_95 = arith.constant 0 : index
    %c32_96 = arith.constant 32 : index
    %149 = vector.load %arg4[%c0_95, %c32_96] : memref<32x128xbf16, #tpu.memory_space<vmem>>, vector<32x16xbf16>
    %150 = arith.truncf %119 : vector<8x32xf32> to vector<8x32xbf16>
    %cst_97 = arith.constant dense<0.000000e+00> : vector<8x16xf32>
    %151 = tpu.matmul %150, %149, %cst_97 {dimension_numbers = #tpu.dot_dimension_numbers<[1], [0], [0], [1], [0, 0, 1, 1], [], []>} : vector<8x32xbf16>, vector<32x16xbf16>, vector<8x16xf32> -> vector<8x16xf32>
    %152 = arith.addf %94, %151 : vector<8x16xf32>
    %c0_98 = arith.constant 0 : index
    %c48 = arith.constant 48 : index
    %153 = vector.load %arg4[%c0_98, %c48] : memref<32x128xbf16, #tpu.memory_space<vmem>>, vector<32x16xbf16>
    %154 = arith.truncf %148 : vector<8x32xf32> to vector<8x32xbf16>
    %cst_99 = arith.constant dense<0.000000e+00> : vector<8x16xf32>
    %155 = tpu.matmul %154, %153, %cst_99 {dimension_numbers = #tpu.dot_dimension_numbers<[1], [0], [0], [1], [0, 0, 1, 1], [], []>} : vector<8x32xbf16>, vector<32x16xbf16>, vector<8x16xf32> -> vector<8x16xf32>
    %156 = arith.addf %152, %155 : vector<8x16xf32>
    %c0_100 = arith.constant 0 : index
    %c64_101 = arith.constant 64 : index
    %157 = vector.load %arg1[%c0_100, %c64_101] : memref<16x256xbf16, #tpu.memory_space<vmem>>, vector<16x32xbf16>
    %158 = arith.truncf %152 : vector<8x16xf32> to vector<8x16xbf16>
    %cst_102 = arith.constant dense<0.000000e+00> : vector<8x32xf32>
    %159 = tpu.matmul %158, %157, %cst_102 {dimension_numbers = #tpu.dot_dimension_numbers<[1], [0], [0], [1], [0, 0, 1, 1], [], []>} : vector<8x16xbf16>, vector<16x32xbf16>, vector<8x32xf32> -> vector<8x32xf32>
    %c0_103 = arith.constant 0 : index
    %c160_104 = arith.constant 160 : index
    %160 = vector.load %arg3[%c0_103, %c160_104] : memref<32x256xbf16, #tpu.memory_space<vmem>>, vector<32x32xbf16>
    %161 = arith.truncf %148 : vector<8x32xf32> to vector<8x32xbf16>
    %cst_105 = arith.constant dense<0.000000e+00> : vector<8x32xf32>
    %162 = tpu.matmul %161, %160, %cst_105 {dimension_numbers = #tpu.dot_dimension_numbers<[1], [0], [0], [1], [0, 0, 1, 1], [], []>} : vector<8x32xbf16>, vector<32x32xbf16>, vector<8x32xf32> -> vector<8x32xf32>
    %163 = arith.addf %159, %162 : vector<8x32xf32>
    %c0_106 = arith.constant 0 : index
    %c384 = arith.constant 384 : index
    %164 = vector.load %arg6[%c0_106, %c384] : memref<8x896xf32, #tpu.memory_space<vmem>>, vector<8x32xf32>
    %165 = arith.addf %163, %164 : vector<8x32xf32>
    %c0_107 = arith.constant 0 : index
    %c192_108 = arith.constant 192 : index
    %166 = vector.load %arg1[%c0_107, %c192_108] : memref<16x256xbf16, #tpu.memory_space<vmem>>, vector<16x32xbf16>
    %167 = arith.truncf %156 : vector<8x16xf32> to vector<8x16xbf16>
    %cst_109 = arith.constant dense<0.000000e+00> : vector<8x32xf32>
    %168 = tpu.matmul %167, %166, %cst_109 {dimension_numbers = #tpu.dot_dimension_numbers<[1], [0], [0], [1], [0, 0, 1, 1], [], []>} : vector<8x16xbf16>, vector<16x32xbf16>, vector<8x32xf32> -> vector<8x32xf32>
    %c0_110 = arith.constant 0 : index
    %c480 = arith.constant 480 : index
    %169 = vector.load %arg6[%c0_110, %c480] : memref<8x896xf32, #tpu.memory_space<vmem>>, vector<8x32xf32>
    %170 = arith.addf %168, %169 : vector<8x32xf32>
    %c0_111 = arith.constant 0 : index
    %c32_112 = arith.constant 32 : index
    %171 = vector.load %arg5[%c0_111, %c32_112] : memref<16x128xf32, #tpu.memory_space<vmem>>, vector<16x16xf32>
    %cst_113 = arith.constant dense<0.000000e+00> : vector<8x16xf32>
    %172 = tpu.matmul %156, %171, %cst_113 {dimension_numbers = #tpu.dot_dimension_numbers<[1], [0], [0], [1], [0, 0, 1, 1], [], []>} : vector<8x16xf32>, vector<16x16xf32>, vector<8x16xf32> -> vector<8x16xf32>
    %c0_114 = arith.constant 0 : index
    %c800 = arith.constant 800 : index
    %173 = vector.load %arg6[%c0_114, %c800] : memref<8x896xf32, #tpu.memory_space<vmem>>, vector<8x16xf32>
    %174 = arith.addf %172, %173 : vector<8x16xf32>
    %cst_115 = arith.constant 0.000000e+00 : f32
    %175 = vector.broadcast %cst_115 : f32 to vector<8x32xf32>
    %176 = arith.cmpf ogt, %165, %175 : vector<8x32xf32>
    %cst_116 = arith.constant 0.00999999977 : f32
    %177 = vector.broadcast %cst_116 : f32 to vector<8x32xf32>
    %178 = arith.mulf %177, %165 : vector<8x32xf32>
    %179 = arith.select %176, %165, %178 : vector<8x32xi1>, vector<8x32xf32>
    %c0_117 = arith.constant 0 : index
    %c128_118 = arith.constant 128 : index
    %180 = vector.load %arg2[%c0_117, %c128_118] : memref<64x256xbf16, #tpu.memory_space<vmem>>, vector<32x32xbf16>
    %181 = arith.truncf %179 : vector<8x32xf32> to vector<8x32xbf16>
    %cst_119 = arith.constant dense<0.000000e+00> : vector<8x32xf32>
    %182 = tpu.matmul %181, %180, %cst_119 {dimension_numbers = #tpu.dot_dimension_numbers<[1], [0], [0], [1], [0, 0, 1, 1], [], []>} : vector<8x32xbf16>, vector<32x32xbf16>, vector<8x32xf32> -> vector<8x32xf32>
    %c0_120 = arith.constant 0 : index
    %c416 = arith.constant 416 : index
    %183 = vector.load %arg6[%c0_120, %c416] : memref<8x896xf32, #tpu.memory_space<vmem>>, vector<8x32xf32>
    %184 = arith.addf %182, %183 : vector<8x32xf32>
    %cst_121 = arith.constant 0.000000e+00 : f32
    %185 = vector.broadcast %cst_121 : f32 to vector<8x32xf32>
    %186 = arith.cmpf ogt, %184, %185 : vector<8x32xf32>
    %cst_122 = arith.constant 0.00999999977 : f32
    %187 = vector.broadcast %cst_122 : f32 to vector<8x32xf32>
    %188 = arith.mulf %187, %184 : vector<8x32xf32>
    %189 = arith.select %186, %184, %188 : vector<8x32xi1>, vector<8x32xf32>
    %c32_123 = arith.constant 32 : index
    %c128_124 = arith.constant 128 : index
    %190 = vector.load %arg2[%c32_123, %c128_124] : memref<64x256xbf16, #tpu.memory_space<vmem>>, vector<32x32xbf16>
    %191 = arith.truncf %189 : vector<8x32xf32> to vector<8x32xbf16>
    %cst_125 = arith.constant dense<0.000000e+00> : vector<8x32xf32>
    %192 = tpu.matmul %191, %190, %cst_125 {dimension_numbers = #tpu.dot_dimension_numbers<[1], [0], [0], [1], [0, 0, 1, 1], [], []>} : vector<8x32xbf16>, vector<32x32xbf16>, vector<8x32xf32> -> vector<8x32xf32>
    %c0_126 = arith.constant 0 : index
    %c448 = arith.constant 448 : index
    %193 = vector.load %arg6[%c0_126, %c448] : memref<8x896xf32, #tpu.memory_space<vmem>>, vector<8x32xf32>
    %194 = arith.addf %192, %193 : vector<8x32xf32>
    %cst_127 = arith.constant 0.000000e+00 : f32
    %195 = vector.broadcast %cst_127 : f32 to vector<8x32xf32>
    %196 = arith.cmpf ogt, %194, %195 : vector<8x32xf32>
    %cst_128 = arith.constant 0.00999999977 : f32
    %197 = vector.broadcast %cst_128 : f32 to vector<8x32xf32>
    %198 = arith.mulf %197, %194 : vector<8x32xf32>
    %199 = arith.select %196, %194, %198 : vector<8x32xi1>, vector<8x32xf32>
    %c0_129 = arith.constant 0 : index
    %c64_130 = arith.constant 64 : index
    %200 = vector.load %arg3[%c0_129, %c64_130] : memref<32x256xbf16, #tpu.memory_space<vmem>>, vector<32x32xbf16>
    %201 = arith.truncf %199 : vector<8x32xf32> to vector<8x32xbf16>
    %cst_131 = arith.constant dense<0.000000e+00> : vector<8x32xf32>
    %202 = tpu.matmul %201, %200, %cst_131 {dimension_numbers = #tpu.dot_dimension_numbers<[1], [0], [0], [1], [0, 0, 1, 1], [], []>} : vector<8x32xbf16>, vector<32x32xbf16>, vector<8x32xf32> -> vector<8x32xf32>
    %203 = arith.addf %202, %170 : vector<8x32xf32>
    %cst_132 = arith.constant 0.000000e+00 : f32
    %204 = vector.broadcast %cst_132 : f32 to vector<8x32xf32>
    %205 = arith.cmpf ogt, %203, %204 : vector<8x32xf32>
    %cst_133 = arith.constant 0.00999999977 : f32
    %206 = vector.broadcast %cst_133 : f32 to vector<8x32xf32>
    %207 = arith.mulf %206, %203 : vector<8x32xf32>
    %208 = arith.select %205, %203, %207 : vector<8x32xi1>, vector<8x32xf32>
    %c0_134 = arith.constant 0 : index
    %c160_135 = arith.constant 160 : index
    %209 = vector.load %arg2[%c0_134, %c160_135] : memref<64x256xbf16, #tpu.memory_space<vmem>>, vector<32x32xbf16>
    %210 = arith.truncf %208 : vector<8x32xf32> to vector<8x32xbf16>
    %cst_136 = arith.constant dense<0.000000e+00> : vector<8x32xf32>
    %211 = tpu.matmul %210, %209, %cst_136 {dimension_numbers = #tpu.dot_dimension_numbers<[1], [0], [0], [1], [0, 0, 1, 1], [], []>} : vector<8x32xbf16>, vector<32x32xbf16>, vector<8x32xf32> -> vector<8x32xf32>
    %c0_137 = arith.constant 0 : index
    %c512 = arith.constant 512 : index
    %212 = vector.load %arg6[%c0_137, %c512] : memref<8x896xf32, #tpu.memory_space<vmem>>, vector<8x32xf32>
    %213 = arith.addf %211, %212 : vector<8x32xf32>
    %cst_138 = arith.constant 0.000000e+00 : f32
    %214 = vector.broadcast %cst_138 : f32 to vector<8x32xf32>
    %215 = arith.cmpf ogt, %213, %214 : vector<8x32xf32>
    %cst_139 = arith.constant 0.00999999977 : f32
    %216 = vector.broadcast %cst_139 : f32 to vector<8x32xf32>
    %217 = arith.mulf %216, %213 : vector<8x32xf32>
    %218 = arith.select %215, %213, %217 : vector<8x32xi1>, vector<8x32xf32>
    %c32_140 = arith.constant 32 : index
    %c160_141 = arith.constant 160 : index
    %219 = vector.load %arg2[%c32_140, %c160_141] : memref<64x256xbf16, #tpu.memory_space<vmem>>, vector<32x32xbf16>
    %220 = arith.truncf %218 : vector<8x32xf32> to vector<8x32xbf16>
    %cst_142 = arith.constant dense<0.000000e+00> : vector<8x32xf32>
    %221 = tpu.matmul %220, %219, %cst_142 {dimension_numbers = #tpu.dot_dimension_numbers<[1], [0], [0], [1], [0, 0, 1, 1], [], []>} : vector<8x32xbf16>, vector<32x32xbf16>, vector<8x32xf32> -> vector<8x32xf32>
    %c0_143 = arith.constant 0 : index
    %c544 = arith.constant 544 : index
    %222 = vector.load %arg6[%c0_143, %c544] : memref<8x896xf32, #tpu.memory_space<vmem>>, vector<8x32xf32>
    %223 = arith.addf %221, %222 : vector<8x32xf32>
    %cst_144 = arith.constant 0.000000e+00 : f32
    %224 = vector.broadcast %cst_144 : f32 to vector<8x32xf32>
    %225 = arith.cmpf ogt, %223, %224 : vector<8x32xf32>
    %cst_145 = arith.constant 0.00999999977 : f32
    %226 = vector.broadcast %cst_145 : f32 to vector<8x32xf32>
    %227 = arith.mulf %226, %223 : vector<8x32xf32>
    %228 = arith.select %225, %223, %227 : vector<8x32xi1>, vector<8x32xf32>
    %c0_146 = arith.constant 0 : index
    %c64_147 = arith.constant 64 : index
    %229 = vector.load %arg4[%c0_146, %c64_147] : memref<32x128xbf16, #tpu.memory_space<vmem>>, vector<32x16xbf16>
    %230 = arith.truncf %199 : vector<8x32xf32> to vector<8x32xbf16>
    %cst_148 = arith.constant dense<0.000000e+00> : vector<8x16xf32>
    %231 = tpu.matmul %230, %229, %cst_148 {dimension_numbers = #tpu.dot_dimension_numbers<[1], [0], [0], [1], [0, 0, 1, 1], [], []>} : vector<8x32xbf16>, vector<32x16xbf16>, vector<8x16xf32> -> vector<8x16xf32>
    %232 = arith.addf %174, %231 : vector<8x16xf32>
    %c0_149 = arith.constant 0 : index
    %c80 = arith.constant 80 : index
    %233 = vector.load %arg4[%c0_149, %c80] : memref<32x128xbf16, #tpu.memory_space<vmem>>, vector<32x16xbf16>
    %234 = arith.truncf %228 : vector<8x32xf32> to vector<8x32xbf16>
    %cst_150 = arith.constant dense<0.000000e+00> : vector<8x16xf32>
    %235 = tpu.matmul %234, %233, %cst_150 {dimension_numbers = #tpu.dot_dimension_numbers<[1], [0], [0], [1], [0, 0, 1, 1], [], []>} : vector<8x32xbf16>, vector<32x16xbf16>, vector<8x16xf32> -> vector<8x16xf32>
    %236 = arith.addf %232, %235 : vector<8x16xf32>
    %c0_151 = arith.constant 0 : index
    %c96_152 = arith.constant 96 : index
    %237 = vector.load %arg1[%c0_151, %c96_152] : memref<16x256xbf16, #tpu.memory_space<vmem>>, vector<16x32xbf16>
    %238 = arith.truncf %232 : vector<8x16xf32> to vector<8x16xbf16>
    %cst_153 = arith.constant dense<0.000000e+00> : vector<8x32xf32>
    %239 = tpu.matmul %238, %237, %cst_153 {dimension_numbers = #tpu.dot_dimension_numbers<[1], [0], [0], [1], [0, 0, 1, 1], [], []>} : vector<8x16xbf16>, vector<16x32xbf16>, vector<8x32xf32> -> vector<8x32xf32>
    %c0_154 = arith.constant 0 : index
    %c192_155 = arith.constant 192 : index
    %240 = vector.load %arg3[%c0_154, %c192_155] : memref<32x256xbf16, #tpu.memory_space<vmem>>, vector<32x32xbf16>
    %241 = arith.truncf %228 : vector<8x32xf32> to vector<8x32xbf16>
    %cst_156 = arith.constant dense<0.000000e+00> : vector<8x32xf32>
    %242 = tpu.matmul %241, %240, %cst_156 {dimension_numbers = #tpu.dot_dimension_numbers<[1], [0], [0], [1], [0, 0, 1, 1], [], []>} : vector<8x32xbf16>, vector<32x32xbf16>, vector<8x32xf32> -> vector<8x32xf32>
    %243 = arith.addf %239, %242 : vector<8x32xf32>
    %c0_157 = arith.constant 0 : index
    %c576 = arith.constant 576 : index
    %244 = vector.load %arg6[%c0_157, %c576] : memref<8x896xf32, #tpu.memory_space<vmem>>, vector<8x32xf32>
    %245 = arith.addf %243, %244 : vector<8x32xf32>
    %c0_158 = arith.constant 0 : index
    %c224_159 = arith.constant 224 : index
    %246 = vector.load %arg1[%c0_158, %c224_159] : memref<16x256xbf16, #tpu.memory_space<vmem>>, vector<16x32xbf16>
    %247 = arith.truncf %236 : vector<8x16xf32> to vector<8x16xbf16>
    %cst_160 = arith.constant dense<0.000000e+00> : vector<8x32xf32>
    %248 = tpu.matmul %247, %246, %cst_160 {dimension_numbers = #tpu.dot_dimension_numbers<[1], [0], [0], [1], [0, 0, 1, 1], [], []>} : vector<8x16xbf16>, vector<16x32xbf16>, vector<8x32xf32> -> vector<8x32xf32>
    %c0_161 = arith.constant 0 : index
    %c672 = arith.constant 672 : index
    %249 = vector.load %arg6[%c0_161, %c672] : memref<8x896xf32, #tpu.memory_space<vmem>>, vector<8x32xf32>
    %250 = arith.addf %248, %249 : vector<8x32xf32>
    %c0_162 = arith.constant 0 : index
    %c48_163 = arith.constant 48 : index
    %251 = vector.load %arg5[%c0_162, %c48_163] : memref<16x128xf32, #tpu.memory_space<vmem>>, vector<16x16xf32>
    %cst_164 = arith.constant dense<0.000000e+00> : vector<8x16xf32>
    %252 = tpu.matmul %236, %251, %cst_164 {dimension_numbers = #tpu.dot_dimension_numbers<[1], [0], [0], [1], [0, 0, 1, 1], [], []>} : vector<8x16xf32>, vector<16x16xf32>, vector<8x16xf32> -> vector<8x16xf32>
    %c0_165 = arith.constant 0 : index
    %c816 = arith.constant 816 : index
    %253 = vector.load %arg6[%c0_165, %c816] : memref<8x896xf32, #tpu.memory_space<vmem>>, vector<8x16xf32>
    %254 = arith.addf %252, %253 : vector<8x16xf32>
    %cst_166 = arith.constant 0.000000e+00 : f32
    %255 = vector.broadcast %cst_166 : f32 to vector<8x32xf32>
    %256 = arith.cmpf ogt, %245, %255 : vector<8x32xf32>
    %cst_167 = arith.constant 0.00999999977 : f32
    %257 = vector.broadcast %cst_167 : f32 to vector<8x32xf32>
    %258 = arith.mulf %257, %245 : vector<8x32xf32>
    %259 = arith.select %256, %245, %258 : vector<8x32xi1>, vector<8x32xf32>
    %c0_168 = arith.constant 0 : index
    %c192_169 = arith.constant 192 : index
    %260 = vector.load %arg2[%c0_168, %c192_169] : memref<64x256xbf16, #tpu.memory_space<vmem>>, vector<32x32xbf16>
    %261 = arith.truncf %259 : vector<8x32xf32> to vector<8x32xbf16>
    %cst_170 = arith.constant dense<0.000000e+00> : vector<8x32xf32>
    %262 = tpu.matmul %261, %260, %cst_170 {dimension_numbers = #tpu.dot_dimension_numbers<[1], [0], [0], [1], [0, 0, 1, 1], [], []>} : vector<8x32xbf16>, vector<32x32xbf16>, vector<8x32xf32> -> vector<8x32xf32>
    %c0_171 = arith.constant 0 : index
    %c608 = arith.constant 608 : index
    %263 = vector.load %arg6[%c0_171, %c608] : memref<8x896xf32, #tpu.memory_space<vmem>>, vector<8x32xf32>
    %264 = arith.addf %262, %263 : vector<8x32xf32>
    %cst_172 = arith.constant 0.000000e+00 : f32
    %265 = vector.broadcast %cst_172 : f32 to vector<8x32xf32>
    %266 = arith.cmpf ogt, %264, %265 : vector<8x32xf32>
    %cst_173 = arith.constant 0.00999999977 : f32
    %267 = vector.broadcast %cst_173 : f32 to vector<8x32xf32>
    %268 = arith.mulf %267, %264 : vector<8x32xf32>
    %269 = arith.select %266, %264, %268 : vector<8x32xi1>, vector<8x32xf32>
    %c32_174 = arith.constant 32 : index
    %c192_175 = arith.constant 192 : index
    %270 = vector.load %arg2[%c32_174, %c192_175] : memref<64x256xbf16, #tpu.memory_space<vmem>>, vector<32x32xbf16>
    %271 = arith.truncf %269 : vector<8x32xf32> to vector<8x32xbf16>
    %cst_176 = arith.constant dense<0.000000e+00> : vector<8x32xf32>
    %272 = tpu.matmul %271, %270, %cst_176 {dimension_numbers = #tpu.dot_dimension_numbers<[1], [0], [0], [1], [0, 0, 1, 1], [], []>} : vector<8x32xbf16>, vector<32x32xbf16>, vector<8x32xf32> -> vector<8x32xf32>
    %c0_177 = arith.constant 0 : index
    %c640 = arith.constant 640 : index
    %273 = vector.load %arg6[%c0_177, %c640] : memref<8x896xf32, #tpu.memory_space<vmem>>, vector<8x32xf32>
    %274 = arith.addf %272, %273 : vector<8x32xf32>
    %cst_178 = arith.constant 0.000000e+00 : f32
    %275 = vector.broadcast %cst_178 : f32 to vector<8x32xf32>
    %276 = arith.cmpf ogt, %274, %275 : vector<8x32xf32>
    %cst_179 = arith.constant 0.00999999977 : f32
    %277 = vector.broadcast %cst_179 : f32 to vector<8x32xf32>
    %278 = arith.mulf %277, %274 : vector<8x32xf32>
    %279 = arith.select %276, %274, %278 : vector<8x32xi1>, vector<8x32xf32>
    %c0_180 = arith.constant 0 : index
    %c96_181 = arith.constant 96 : index
    %280 = vector.load %arg3[%c0_180, %c96_181] : memref<32x256xbf16, #tpu.memory_space<vmem>>, vector<32x32xbf16>
    %281 = arith.truncf %279 : vector<8x32xf32> to vector<8x32xbf16>
    %cst_182 = arith.constant dense<0.000000e+00> : vector<8x32xf32>
    %282 = tpu.matmul %281, %280, %cst_182 {dimension_numbers = #tpu.dot_dimension_numbers<[1], [0], [0], [1], [0, 0, 1, 1], [], []>} : vector<8x32xbf16>, vector<32x32xbf16>, vector<8x32xf32> -> vector<8x32xf32>
    %283 = arith.addf %282, %250 : vector<8x32xf32>
    %cst_183 = arith.constant 0.000000e+00 : f32
    %284 = vector.broadcast %cst_183 : f32 to vector<8x32xf32>
    %285 = arith.cmpf ogt, %283, %284 : vector<8x32xf32>
    %cst_184 = arith.constant 0.00999999977 : f32
    %286 = vector.broadcast %cst_184 : f32 to vector<8x32xf32>
    %287 = arith.mulf %286, %283 : vector<8x32xf32>
    %288 = arith.select %285, %283, %287 : vector<8x32xi1>, vector<8x32xf32>
    %c0_185 = arith.constant 0 : index
    %c224_186 = arith.constant 224 : index
    %289 = vector.load %arg2[%c0_185, %c224_186] : memref<64x256xbf16, #tpu.memory_space<vmem>>, vector<32x32xbf16>
    %290 = arith.truncf %288 : vector<8x32xf32> to vector<8x32xbf16>
    %cst_187 = arith.constant dense<0.000000e+00> : vector<8x32xf32>
    %291 = tpu.matmul %290, %289, %cst_187 {dimension_numbers = #tpu.dot_dimension_numbers<[1], [0], [0], [1], [0, 0, 1, 1], [], []>} : vector<8x32xbf16>, vector<32x32xbf16>, vector<8x32xf32> -> vector<8x32xf32>
    %c0_188 = arith.constant 0 : index
    %c704 = arith.constant 704 : index
    %292 = vector.load %arg6[%c0_188, %c704] : memref<8x896xf32, #tpu.memory_space<vmem>>, vector<8x32xf32>
    %293 = arith.addf %291, %292 : vector<8x32xf32>
    %cst_189 = arith.constant 0.000000e+00 : f32
    %294 = vector.broadcast %cst_189 : f32 to vector<8x32xf32>
    %295 = arith.cmpf ogt, %293, %294 : vector<8x32xf32>
    %cst_190 = arith.constant 0.00999999977 : f32
    %296 = vector.broadcast %cst_190 : f32 to vector<8x32xf32>
    %297 = arith.mulf %296, %293 : vector<8x32xf32>
    %298 = arith.select %295, %293, %297 : vector<8x32xi1>, vector<8x32xf32>
    %c32_191 = arith.constant 32 : index
    %c224_192 = arith.constant 224 : index
    %299 = vector.load %arg2[%c32_191, %c224_192] : memref<64x256xbf16, #tpu.memory_space<vmem>>, vector<32x32xbf16>
    %300 = arith.truncf %298 : vector<8x32xf32> to vector<8x32xbf16>
    %cst_193 = arith.constant dense<0.000000e+00> : vector<8x32xf32>
    %301 = tpu.matmul %300, %299, %cst_193 {dimension_numbers = #tpu.dot_dimension_numbers<[1], [0], [0], [1], [0, 0, 1, 1], [], []>} : vector<8x32xbf16>, vector<32x32xbf16>, vector<8x32xf32> -> vector<8x32xf32>
    %c0_194 = arith.constant 0 : index
    %c736 = arith.constant 736 : index
    %302 = vector.load %arg6[%c0_194, %c736] : memref<8x896xf32, #tpu.memory_space<vmem>>, vector<8x32xf32>
    %303 = arith.addf %301, %302 : vector<8x32xf32>
    %cst_195 = arith.constant 0.000000e+00 : f32
    %304 = vector.broadcast %cst_195 : f32 to vector<8x32xf32>
    %305 = arith.cmpf ogt, %303, %304 : vector<8x32xf32>
    %cst_196 = arith.constant 0.00999999977 : f32
    %306 = vector.broadcast %cst_196 : f32 to vector<8x32xf32>
    %307 = arith.mulf %306, %303 : vector<8x32xf32>
    %308 = arith.select %305, %303, %307 : vector<8x32xi1>, vector<8x32xf32>
    %c0_197 = arith.constant 0 : index
    %c96_198 = arith.constant 96 : index
    %309 = vector.load %arg4[%c0_197, %c96_198] : memref<32x128xbf16, #tpu.memory_space<vmem>>, vector<32x16xbf16>
    %310 = arith.truncf %279 : vector<8x32xf32> to vector<8x32xbf16>
    %cst_199 = arith.constant dense<0.000000e+00> : vector<8x16xf32>
    %311 = tpu.matmul %310, %309, %cst_199 {dimension_numbers = #tpu.dot_dimension_numbers<[1], [0], [0], [1], [0, 0, 1, 1], [], []>} : vector<8x32xbf16>, vector<32x16xbf16>, vector<8x16xf32> -> vector<8x16xf32>
    %312 = arith.addf %254, %311 : vector<8x16xf32>
    %c0_200 = arith.constant 0 : index
    %c112 = arith.constant 112 : index
    %313 = vector.load %arg4[%c0_200, %c112] : memref<32x128xbf16, #tpu.memory_space<vmem>>, vector<32x16xbf16>
    %314 = arith.truncf %308 : vector<8x32xf32> to vector<8x32xbf16>
    %cst_201 = arith.constant dense<0.000000e+00> : vector<8x16xf32>
    %315 = tpu.matmul %314, %313, %cst_201 {dimension_numbers = #tpu.dot_dimension_numbers<[1], [0], [0], [1], [0, 0, 1, 1], [], []>} : vector<8x32xbf16>, vector<32x16xbf16>, vector<8x16xf32> -> vector<8x16xf32>
    %316 = arith.addf %312, %315 : vector<8x16xf32>
    %c0_202 = arith.constant 0 : index
    %c0_203 = arith.constant 0 : index
    %317 = vector.load %arg7[%c0_202, %c0_203] : memref<8x16xf32, #tpu.memory_space<vmem>>, vector<8x16xf32>
    tpu.vector_store %arg7[%c0_202, %c0_203], %316 {strides = array<i32>} : memref<8x16xf32, #tpu.memory_space<vmem>>, vector<8x16xf32>,
    return
  }
}

</mosaic_0001>

<bundles_post_ra>
// kernel: nice_flow_forward.1
= control target key start
LH: loop header
LB: loop body
LE: loop exit
PB: predicated region body
PF: predicated region fallthrough
CT: control target
= control target key end

     0   :  { %12 = vsyncpa [#allocation3], 0  ;;  %s2048_s0 = inlined_call_operand.hbm [shape: f32[8,16], index: 0, kind: input, shape index: {}]   ;;  %s2049_s1 = inlined_call_operand.hbm [shape: bf16[16,256], index: 1, kind: input, shape index: {}]   ;;  %s2050_s2 = inlined_call_operand.hbm [shape: bf16[64,256], index: 2, kind: input, shape index: {}]   ;;  %s2051_s3 = inlined_call_operand.hbm [shape: bf16[32,256], index: 3, kind: input, shape index: {}]   ;;  %s2052_s4 = inlined_call_operand.hbm [shape: bf16[32,128], index: 4, kind: input, shape index: {}]   ;;  %s2053_s5 = inlined_call_operand.hbm [shape: f32[16,128], index: 5, kind: input, shape index: {}]   ;;  %s2054_s6 = inlined_call_operand.hbm [shape: f32[8,896], index: 6, kind: input, shape index: {}]   ;;  %s2055_s7 = inlined_call_operand.hbm [shape: f32[8,16], index: 7, kind: output, shape index: {}]  }
   0x1   :  { %13 = vsyncpa [#allocation6], 0 }
   0x2   :  { %14 = vsyncpa [#allocation9], 0 }
   0x3   :  { %15 = vsyncpa [#allocation12], 0  ;;  %s32_s26 = sshll.u32 %s2049_s1, 4  ;;  %s33_s26 = int_to_ptr.hbm [resolvable:$true] %s32_s26 }
   0x4   :  { %16 = vsyncpa [#allocation4], 0  ;;  %s1710_s27 = smov [#allocation5]   ;;  %s58_s8 = sshll.u32 %s2051_s3, 4  ;;  %s59_s8 = int_to_ptr.hbm [resolvable:$true] %s58_s8 }
   0x5   :  { %s34_s28 = sshll.u32 %s1710_s27, 4  ;;  %s1711_s9 = smov 128   ;;  %s35_s28 = int_to_ptr.vmem [resolvable:$true] %s34_s28 }
   0x6   :  { %s1712_s10 = smov 8   ;;  %s1713_s11 = smov [#allocation8]  }
   0x7   :  { %40 = dma.hbm_to_vmem [thread:$0]  %s33_s26, 256, %s35_s28, [#allocation6], %s1711_s9, %s1711_s9, %s1712_s10  }
   0x8   :  { %s60_s12 = sshll.u32 %s1713_s11, 4  ;;  %s84_s14 = sshll.u32 %s2053_s5, 4  ;;  %s61_s12 = int_to_ptr.vmem [resolvable:$true] %s60_s12  ;;  %s85_s14 = int_to_ptr.hbm [resolvable:$true] %s84_s14 }
   0x9   :  { %66 = dma.hbm_to_vmem [thread:$0]  %s59_s8, 512, %s61_s12, [#allocation9], %s1711_s9, %s1711_s9, %s1712_s10  }
   0xa   :  { %s22_s16 = sshll.u32 %s2048_s0, 4  ;;  %s1714_s17 = smov [#allocation11]   ;;  %s23_s16 = int_to_ptr.hbm [resolvable:$true] %s22_s16 }
   0xb   :  { %s86_s18 = sshll.u32 %s1714_s17, 4  ;;  %s1715_s19 = smov [#allocation2]   ;;  %s87_s18 = int_to_ptr.vmem [resolvable:$true] %s86_s18 }
   0xc   :  { %92 = dma.hbm_to_vmem [thread:$0]  %s85_s14, 256, %s87_s18, [#allocation12], %s1711_s9, %s1711_s9, %s1712_s10  }
   0xd   :  { %s24_s5 = sshll.u32 %s1715_s19, 4  ;;  %s45_s22 = sshll.u32 %s2050_s2, 4  ;;  %s25_s5 = int_to_ptr.vmem [resolvable:$true] %s24_s5  ;;  %s46_s22 = int_to_ptr.hbm [resolvable:$true] %s45_s22 }
   0xe   :  { %27 = dma.hbm_to_vmem [thread:$0]  %s23_s16, 128, %s25_s5, [#allocation3]  }
   0xf   :  { %s71_s0 = sshll.u32 %s2052_s4, 4  ;;  %s1716_s25 = smov [#allocation7]   ;;  %s72_s0 = int_to_ptr.hbm [resolvable:$true] %s71_s0 }
  0x10   :  { %s47_s26 = sshll.u32 %s1716_s25, 4  ;;  %s1717_s27 = smov [#allocation10]   ;;  %s48_s26 = int_to_ptr.vmem [resolvable:$true] %s47_s26 }
  0x11   :  { %53 = dma.hbm_to_vmem [thread:$0]  %s46_s22, 1024, %s48_s26, [#allocation6], %s1711_s9, %s1711_s9, %s1712_s10  }
  0x12   :  { %s73_s28 = sshll.u32 %s1717_s27, 4  ;;  %s1718_s29 = smov 64   ;;  %s74_s28 = int_to_ptr.vmem [resolvable:$true] %s73_s28 }
  0x13   :  { %s1719_s2 = smov 4   ;;  %s98_s4 = sshll.u32 %s2054_s6, 4  ;;  %s99_s4 = int_to_ptr.hbm [resolvable:$true] %s98_s4 }
  0x14   :  { %79 = dma.hbm_to_vmem [thread:$0]  %s72_s0, 256, %s74_s28, [#allocation9], %s1718_s29, %s1718_s29, %s1719_s2  }
  0x15   :  { %s1720_s11 = smov [#allocation13]  }
  0x16   :  { %s100_s12 = sshll.u32 %s1720_s11, 4  ;;  %s101_s12 = int_to_ptr.vmem [resolvable:$true] %s100_s12 }
  0x17   :  { %103 = dma.hbm_to_vmem [thread:$0]  %s99_s4, 896, %s101_s12, [#allocation12]  }
  0x18   :  { %1700 = dma.done.wait [#allocation3], 128  }
  0x19   :  { %1701 = vsyncadd [#allocation3], 4294967168 }
  0x1a   :  { %1702 = dma.done.wait [#allocation6], 1280  }
  0x1b   :  { %1703 = vsyncadd [#allocation6], 4294966016 }
  0x1c   :  { %1704 = dma.done.wait [#allocation9], 768  }
  0x1d   :  { %1705 = vsyncadd [#allocation9], 4294966528 }
  0x1e   :  { %1706 = dma.done.wait [#allocation12], 1152  }
  0x1f   :  { %1707 = vsyncadd [#allocation12], 4294966144  ;;  %v1354_v0 = vld [vmem:[#allocation5] sm:$0xf]  ;;  %v1459_v1 = vld [vmem:[#allocation5 + $0x4] sm:$0xf0] }
  0x20   :  { %v133_v2 = vld [vmem:[#allocation2] sm:$0xff]  ;;  %v1803_v3 = vor.u32 %v1459_v1, %v1354_v0  ;;  %vm144_vm0 = vcmask 130048   ;;  %v137_v5 = vld [vmem:[#allocation13] sm:$0xff]  ;;  %s1721_s6 = smov 96   ;;  %v1369_v6 = vld [vmem:[#allocation7 + $0x10] sm:$0xf] }
  0x21   :  { %v136_v4 = vpack.c.bf16 %v133_v2, %v133_v2  ;;  %232 = vrot.lane.b32.xlu0 %v137_v5, %s1721_s6  ;;  %v1462_v7 = vld [vmem:[#allocation7 + $0x14] sm:$0xf0]  ;;  %v1365_v9 = vld [vmem:[#allocation7] sm:$0xf]  ;;  %v1461_v10 = vld [vmem:[#allocation7 + $0x4] sm:$0xf0] }
  0x22   :  { %155 = vmatpush.bf16.msra.mxu0 %v1803_v3  ;;  %v1809_v8 = vor.u32 %v1462_v7, %v1369_v6  ;;  %v1812_v11 = vor.u32 %v1461_v10, %v1365_v9  ;;  %v1817_v12 = vld [vmem:[#allocation11 + $0x8] sm:$0xff]  ;;  %v1819_v13 = vld [vmem:[#allocation11] sm:$0xff]  ;;  %vm235_vm2 = vcmask 261120   ;;  %v1374_v23 = vld [vmem:[#allocation7 + $0x20] sm:$0xf]  ;;  %s1722_s9 = smov 32  }
  0x23   :  { %v1378_v14 = vld [vmem:[#allocation7 + $0x30] sm:$0xf]  ;;  %206 = vmatpush.msra.mxu2 %v1817_v12  ;;  %v1464_v15 = vld [vmem:[#allocation7 + $0x34] sm:$0xf0]  ;;  %v1463_v24 = vld [vmem:[#allocation7 + $0x24] sm:$0xf0]  ;;  %170 = vrot.lane.b32.xlu1 %v137_v5, %s1722_s9 }
  0x24   :  { %245 = vmatpush.bf16.msra.mxu3 %v1809_v8  ;;  %332 = vrot.lane.b32.xlu2 %v1812_v11, %s1721_s6  ;;  %v1822_v16 = vor.u32 %v1464_v15, %v1378_v14  ;;  %v1830_v25 = vor.u32 %v1463_v24, %v1374_v23  ;;  %v1359_v26 = vld [vmem:[#allocation5 + $0x4] sm:$0xf]  ;;  %v1460_v27 = vld [vmem:[#allocation5 + $0x8] sm:$0xf0]  ;;  %v1387_v29 = vld [vmem:[#allocation8 + $0x10] sm:$0xf] }
  0x25   :  { %1356 = vmatmul.msk.bf16.vlgmr.msra.gmra.mxu0 %vm144_vm0, %v136_v4  ;;  %207 = vmatpush.msra.mxu2 %v1819_v13  ;;  %v1835_v28 = vor.u32 %v1460_v27, %v1359_v26  ;;  %v1466_v30 = vld [vmem:[#allocation8 + $0x14] sm:$0xf0]  ;;  %v1852_v39 = vld [vmem:[#allocation10 + $0x8] sm:$0xff]  ;;  %v1383_v40 = vld [vmem:[#allocation8] sm:$0xf]  ;;  %s1723_s10 = smov 112  }
  0x26   :  { %1362 = vmatmul.msk.f32.vlgmr.msra.gmra.mxu2 %vm144_vm0, %v133_v2  ;;  %v1837_v31 = vor.u32 %v1466_v30, %v1387_v29  ;;  %v1465_v41 = vld [vmem:[#allocation8 + $0x4] sm:$0xf0]  ;;  %v1857_v43 = vld [vmem:[#allocation10] sm:$0xff]  ;;  %v1408_v9 = vld [vmem:[#allocation8 + $0x14] sm:$0xf]  ;;  %s1724_s13 = smov 80  }
  0x27   :  { %284 = vmatpush.bf16.msrb.mxu2 %v1822_v16  ;;  %180 = vmatpush.bf16.msra.mxu1 %v1835_v28  ;;  %v1855_v42 = vor.u32 %v1465_v41, %v1383_v40  ;;  %v331_v59 = vld [vmem:[#allocation13 + $0x8] sm:$0xff]  ;;  %v1470_v10 = vld [vmem:[#allocation8 + $0x18] sm:$0xf0]  ;;  %v1897_v23 = vld [vmem:[#allocation13 + $0x30] sm:$0xff]  ;;  %s1725_s1 = smov 48   ;;  %s1726_s14 = smov 16  }
  0x28   :  { %246 = vmatpush.bf16.msra.mxu3 %v1812_v11  ;;  %320 = vmatpush.bf16.msrb.mxu0 %v1837_v31  ;;  %v1893_v14 = vor.u32 %v1470_v10, %v1408_v9  ;;  %v1404_v29 = vld [vmem:[#allocation8 + $0x4] sm:$0xf]  ;;  %v1469_v30 = vld [vmem:[#allocation8 + $0x8] sm:$0xf0]  ;;  %s1727_s3 = smov [#allocation14]   ;;  %s1339_s18 = sshll.u32 %s2055_s7, 4  ;;  %s1340_s18 = int_to_ptr.hbm [resolvable:$true] %s1339_s18 }
  0x29   :  { %272 = vrot.lane.b32.xlu0 %v137_v5, %s1718_s29  ;;  %s1337_s15 = sshll.u32 %s1727_s3, 4  ;;  %s1338_s15 = int_to_ptr.vmem [resolvable:$true] %s1337_s15 }
  0x2a   :  { %1361 = vmatmul.msk.bf16.vlgmr.msra.gmra.mxu1 %vm144_vm0, %v136_v4 }
  0x2b   :  { %285 = vmatpush.bf16.msrb.mxu2 %v1830_v25  ;;  %334 = vrot.lane.b32.xlu1 %v1809_v8, %s1721_s6 }
  0x2c   :  { %360 = vrot.lane.b32.xlu2 %v1822_v16, %s1721_s6  ;;  %321 = vmatpush.bf16.msrb.mxu0 %v1855_v42 }
  0x2f   :  { %409 = vmatpush.bf16.msra.mxu2 %v1852_v39 }
  0x31   :  { %358 = vrot.lane.b32.xlu0 %v1830_v25, %s1721_s6 }
  0x33   :  { %471 = vrot.lane.b32.xlu1 %v1803_v3, %s1721_s6  ;;  %410 = vmatpush.bf16.msra.mxu2 %v1857_v43 }
  0x34   :  { %365 = vrot.lane.b32.xlu2 %v331_v59, %s1721_s6 }
  0x39   :  { %490 = vrot.lane.b32.xlu0 %v331_v59, %s1718_s29 }
  0x3b   :  { %560 = vrot.lane.b32.xlu1 %v1809_v8, %s1718_s29 }
  0x3c   :  { %558 = vrot.lane.b32.xlu2 %v1812_v11, %s1718_s29 }
  0x41   :  { %564 = vrot.lane.b32.xlu0 %v331_v59, %s1722_s9 }
  0x43   :  { %589 = vrot.lane.b32.xlu1 %v1822_v16, %s1718_s29 }
  0x44   :  { %420 = vrot.lane.b32.xlu2 %v1852_v39, %s1723_s10 }
  0x49   :  { %587 = vrot.lane.b32.xlu0 %v1830_v25, %s1718_s29 }
  0x4b   :  { %418 = vrot.lane.b32.xlu1 %v1857_v43, %s1723_s10 }
  0x4c   :  { %496 = vrot.lane.b32.xlu2 %v1835_v28, %s1721_s6 }
  0x53   :  { %615 = vrot.lane.b32.xlu1 %v1837_v31, %s1721_s6 }
  0x54   :  { %613 = vrot.lane.b32.xlu2 %v1855_v42, %s1721_s6 }
  0x5b   :  { %641 = vrot.lane.b32.xlu1 %v1809_v8, %s1722_s9 }
  0x5c   :  { %639 = vrot.lane.b32.xlu2 %v1812_v11, %s1722_s9 }
  0x63   :  { %670 = vrot.lane.b32.xlu1 %v1822_v16, %s1722_s9 }
  0x64   :  { %698 = vrot.lane.b32.xlu2 %v1852_v39, %s1721_s6 }
  0x6b   :  { %696 = vrot.lane.b32.xlu1 %v1857_v43, %s1721_s6 }
  0x7e   :  { %v333_v54 = vpop.permute.xlu2 %332 }
  0x86   :  { %v361_v58 = vpop.permute.xlu2 %360 }
  0x87   :  { %377 = vmatpush.bf16.msrb.mxu3 %v361_v58 }
  0x8e   :  { %v366_v7 = vpop.permute.xlu2 %365 }
  0x93   :  { %v233_v32 = vpop.permute.xlu0 %232 }
  0x95   :  { %v171_v47 = vpop.permute.xlu1 %170 }
  0x96   :  { %v559_v15 = vpop.permute.xlu2 %558 }
  0x9b   :  { %v273_v49 = vpop.permute.xlu0 %272 }
  0x9d   :  { %v335_v52 = vpop.permute.xlu1 %334 }
  0x9e   :  { %347 = vmatpush.bf16.msrb.mxu1 %v335_v52 }
  0xa2   :  { %v157_v17 = vpop.f32.mrf.mxu0  ;;  %348 = vmatpush.bf16.msrb.mxu1 %v333_v54 }
  0xa3   :  { %v158_v18 = vadd.f32 %v157_v17, %v137_v5  ;;  %v359_v60 = vpop.permute.xlu0 %358 }
  0xa4   :  { %378 = vmatpush.bf16.msrb.mxu3 %v359_v60 }
  0xa5   :  { %vm212_vm1 = vcmp.gt.f32.partialorder %v158_v18, 0.0  ;;  %v213_v19 = vmul.f32 0.01, %v158_v18  ;;  %v472_v6 = vpop.permute.xlu1 %471 }
  0xa6   :  { %464 = vmatpush.bf16.msra.mxu1 %v1893_v14 }
  0xa7   :  { %v214_v20 = vsel %vm212_vm1, %v158_v18, %v213_v19  ;;  %v182_v44 = vpop.f32.mrf.mxu1 }
  0xa8   :  { %v219_v21 = vpack.c.bf16 %v214_v20, %v214_v20  ;;  %v183_v48 = vadd.f32 %v182_v44, %v171_v47 }
  0xa9   :  { %v1861_v46 = vpop.f32.mrf.mxu2 }
  0xaa   :  { %v159_v22 = vpop.f32.mrf.mxu0  ;;  %1371 = vmatmul.msk.bf16.vlgmr.msra.gmra.mxu3 %vm235_vm2, %v219_v21  ;;  %v210_v24 = vadd.f32 %v1861_v46, %v1897_v23 }
  0xab   :  { %484 = vmatpush.bf16.msra.mxu3 %v472_v6  ;;  %v421_v22 = vpop.permute.xlu2 %420 }
  0xac   :  { %433 = vmatpush.bf16.msra.mxu0 %v421_v22 }
  0xad   :  { %v561_v8 = vpop.permute.xlu1 %560 }
  0xaf   :  { %v184_v45 = vpop.f32.mrf.mxu1 }
  0xb5   :  { %v590_v20 = vpop.permute.xlu1 %589 }
 0x12d   :  { %v248_v33 = vpop.f32.mrf.mxu3 }
 0x12e   :  { %v249_v34 = vadd.f32 %v248_v33, %v233_v32  ;;  %v1902_v32 = vor.u32 %v1469_v30, %v1404_v29  ;;  %v419_v33 = vpop.permute.xlu1 %418 }
 0x12f   :  { %434 = vmatpush.bf16.msra.mxu0 %v419_v33 }
 0x130   :  { %vm252_vm3 = vcmp.gt.f32.partialorder %v249_v34, 0.0  ;;  %v253_v35 = vmul.f32 0.01, %v249_v34  ;;  %465 = vmatpush.bf16.msra.mxu1 %v1902_v32  ;;  %741 = vrot.lane.b32.xlu1 %v1902_v32, %s1721_s6 }
 0x132   :  { %v254_v36 = vsel %vm252_vm3, %v249_v34, %v253_v35  ;;  %v1909_v34 = vpack.i.bf16 %v1819_v13, %v1817_v12  ;;  %v491_v35 = vpop.permute.xlu0 %490 }
 0x133   :  { %v259_v37 = vpack.c.bf16 %v254_v36, %v254_v36 }
 0x134   :  { %1494 = vrot.lane.b32.xlu0 %v1909_v34, %s1723_s10 }
 0x135   :  { %v250_v38 = vpop.f32.mrf.mxu3  ;;  %1380 = vmatmul.msk.bf16.vlgmr.msrb.gmra.mxu2 %vm235_vm2, %v259_v37 }
 0x138   :  { %719 = vrot.lane.b32.xlu1 %v1852_v39, %s1724_s13 }
 0x13a   :  { %v565_v37 = vpop.permute.xlu0 %564 }
 0x142   :  { %v588_v46 = vpop.permute.xlu0 %587 }
 0x1a6   :  { %v1495_v47 = vpop.permute.xlu0 %1494 }
 0x1b8   :  { %v287_v50 = vpop.f32.mrf.mxu2 }
 0x1b9   :  { %v288_v51 = vadd.f32 %v287_v50, %v273_v49  ;;  %v1496_v49 = vunpack.i.l.bf16 %v1495_v47  ;;  %v497_v50 = vpop.permute.xlu2 %496 }
 0x1ba   :  { %513 = vmatpush.bf16.msrb.mxu2 %v497_v50 }
 0x1bb   :  { %vm291_vm4 = vcmp.gt.f32.partialorder %v288_v51, 0.0  ;;  %v292_v53 = vmul.f32 0.01, %v288_v51 }
 0x1bd   :  { %v293_v55 = vsel %vm291_vm4, %v288_v51, %v292_v53  ;;  %v495_v51 = vld [vmem:[#allocation13 + $0x10] sm:$0xff] }
 0x1be   :  { %v298_v56 = vpack.c.bf16 %v293_v55, %v293_v55  ;;  %500 = vrot.lane.b32.xlu0 %v495_v51, %s1721_s6  ;;  %674 = vrot.lane.b32.xlu2 %v495_v51, %s1722_s9 }
 0x1c0   :  { %v289_v57 = vpop.f32.mrf.mxu2  ;;  %1389 = vmatmul.msk.bf16.vlgmr.msrb.gmra.mxu0 %vm235_vm2, %v298_v56  ;;  %1400 = vmatmul.msk.bf16.vlgmr.msra.gmra.mxu2 %vm235_vm2, %v298_v56 }
 0x1c1   :  { %548 = vmatpush.msrb.mxu0 %v1496_v49  ;;  %v614_v52 = vpop.permute.xlu2 %613 }
 0x1c6   :  { %528 = vrot.lane.b32.xlu2 %v1897_v23, %s1723_s10  ;;  %645 = vrot.lane.b32.xlu0 %v495_v51, %s1718_s29 }
 0x1c9   :  { %v640_v53 = vpop.permute.xlu2 %639 }
 0x1ce   :  { %668 = vrot.lane.b32.xlu0 %v1830_v25, %s1722_s9  ;;  %v616_v25 = vpop.permute.xlu1 %615  ;;  %717 = vrot.lane.b32.xlu2 %v1857_v43, %s1724_s13 }
 0x1d1   :  { %v699_v54 = vpop.permute.xlu2 %698 }
 0x1d6   :  { %743 = vrot.lane.b32.xlu0 %v1893_v14, %s1721_s6  ;;  %782 = vrot.lane.b32.xlu2 %v1835_v28, %s1718_s29 }
 0x1de   :  { %760 = vrot.lane.b32.xlu0 %v1803_v3, %s1718_s29  ;;  %919 = vrot.lane.b32.xlu2 %v1855_v42, %s1718_s29 }
 0x1e6   :  { %1499 = vrot.lane.b32.xlu0 %v1909_v34, %s1721_s6 }
 0x218   :  { %v675_v49 = vpop.permute.xlu2 %674 }
 0x23d   :  { %v323_v61 = vpop.f32.mrf.mxu0 }
 0x23e   :  { %v324_v62 = vadd.f32 %v323_v61, %v183_v48  ;;  %v1497_v48 = vunpack.i.h.bf16 %v1495_v47 }
 0x240   :  { %vm327_vm5 = vcmp.gt.f32.partialorder %v324_v62, 0.0  ;;  %v328_v63 = vmul.f32 0.01, %v324_v62  ;;  %549 = vmatpush.msrb.mxu0 %v1497_v48 }
 0x242   :  { %v329_v0 = vsel %vm327_vm5, %v324_v62, %v328_v63 }
 0x243   :  { %v330_v1 = vpack.c.bf16 %v329_v0, %v329_v0  ;;  %v412_v2 = vpop.f32.mrf.mxu2 }
 0x244   :  { %v416_v26 = vadd.f32 %v412_v2, %v210_v24  ;;  %v642_v2 = vpop.permute.xlu1 %641  ;;  %v501_v24 = vpop.permute.xlu0 %500 }
 0x245   :  { %v325_v4 = vpop.f32.mrf.mxu0  ;;  %1390 = vmatmul.msk.bf16.vlgmr.msrb.gmra.mxu1 %vm235_vm2, %v330_v1  ;;  %657 = vmatpush.bf16.msra.mxu2 %v642_v2 }
 0x246   :  { %v441_v27 = vpack.c.bf16 %v416_v26, %v416_v26  ;;  %576 = vmatpush.bf16.msrb.mxu1 %v561_v8 }
 0x249   :  { %658 = vmatpush.bf16.msra.mxu2 %v640_v53 }
 0x24a   :  { %577 = vmatpush.bf16.msrb.mxu1 %v559_v15 }
 0x24b   :  { %v414_v5 = vpop.f32.mrf.mxu2 }
 0x24c   :  { %v671_v4 = vpop.permute.xlu1 %670 }
 0x2c2   :  { %v350_v11 = vpop.f32.mrf.mxu1 }
 0x2c3   :  { %v351_v17 = vadd.f32 %v350_v11, %v331_v59 }
 0x2c5   :  { %vm354_vm6 = vcmp.gt.f32.partialorder %v351_v17, 0.0  ;;  %v355_v16 = vmul.f32 0.01, %v351_v17 }
 0x2c7   :  { %v356_v18 = vsel %vm354_vm6, %v351_v17, %v355_v16  ;;  %v697_v17 = vpop.permute.xlu1 %696 }
 0x2c8   :  { %v357_v19 = vpack.c.bf16 %v356_v18, %v356_v18 }
 0x2ca   :  { %v352_v21 = vpop.f32.mrf.mxu1  ;;  %1391 = vmatmul.msk.bf16.vlgmr.msrb.gmra.mxu3 %vm235_vm2, %v357_v19 }
 0x2cb   :  { %602 = vmatpush.bf16.msrb.mxu3 %v590_v20 }
 0x2cf   :  { %603 = vmatpush.bf16.msrb.mxu3 %v588_v46 }
 0x2da   :  { %1411 = vmatmul.msk.bf16.vlgmr.msra.gmra.mxu3 %vm144_vm0, %v441_v27 }
 0x2db   :  { %708 = vmatpush.bf16.msra.mxu3 %v699_v54  ;;  %v529_v54 = vpop.permute.xlu2 %528 }
 0x2df   :  { %709 = vmatpush.bf16.msra.mxu3 %v697_v17 }
 0x34d   :  { %v380_v36 = vpop.f32.mrf.mxu3 }
 0x34e   :  { %v381_v38 = vadd.f32 %v380_v36, %v366_v7 }
 0x350   :  { %vm384_vm7 = vcmp.gt.f32.partialorder %v381_v38, 0.0  ;;  %v385_v40 = vmul.f32 0.01, %v381_v38 }
 0x352   :  { %v386_v41 = vsel %vm384_vm7, %v381_v38, %v385_v40 }
 0x353   :  { %v417_v44 = vpack.c.bf16 %v386_v41, %v386_v41 }
 0x355   :  { %v382_v45 = vpop.f32.mrf.mxu3  ;;  %1401 = vmatmul.msk.bf16.vlgmr.msra.gmra.mxu0 %vm235_vm2, %v417_v44  ;;  %1410 = vmatmul.msk.bf16.vlgmr.msra.gmra.mxu1 %vm235_vm2, %v417_v44 }
 0x356   :  { %628 = vmatpush.bf16.msra.mxu0 %v616_v25  ;;  %686 = vmatpush.bf16.msra.mxu1 %v671_v4  ;;  %v1440_v4 = vld [vmem:[#allocation7 + $0x34] sm:$0xf] }
 0x35a   :  { %629 = vmatpush.bf16.msra.mxu0 %v614_v52 }
 0x35d   :  { %v486_v12 = vpop.f32.mrf.mxu3 }
 0x365   :  { %v488_v13 = vpop.f32.mrf.mxu3 }
 0x3d2   :  { %v436_v55 = vpop.f32.mrf.mxu0  ;;  %v467_v56 = vpop.f32.mrf.mxu1 }
 0x3d3   :  { %v440_v57 = vadd.f32 %v436_v55, %v416_v26  ;;  %v487_v58 = vadd.f32 %v486_v12, %v467_v56  ;;  %v646_v26 = vpop.permute.xlu0 %645  ;;  %v742_v12 = vpop.permute.xlu1 %741 }
 0x3d5   :  { %v494_v59 = vpack.c.bf16 %v440_v57, %v440_v57  ;;  %v493_v60 = vadd.f32 %v491_v35, %v487_v58  ;;  %1413 = vmatmul.msk.f32.vlgmr.msrb.gmra.mxu0 %vm144_vm0, %v440_v57  ;;  %v718_v58 = vpop.permute.xlu2 %717 }
 0x3d7   :  { %vm554_vm8 = vcmp.gt.f32.partialorder %v493_v60, 0.0  ;;  %v555_v61 = vmul.f32 0.01, %v493_v60  ;;  %1412 = vmatmul.msk.bf16.vlgmr.msrb.gmra.mxu2 %vm144_vm0, %v494_v59  ;;  %v779_v59 = vld [vmem:[#allocation13 + $0x18] sm:$0xff] }
 0x3d8   :  { %896 = vrot.lane.b32.xlu0 %v779_v59, %s1718_s29  ;;  %857 = vrot.lane.b32.xlu1 %v779_v59, %s1721_s6 }
 0x3d9   :  { %v556_v62 = vsel %vm554_vm8, %v493_v60, %v555_v61 }
 0x3da   :  { %v557_v63 = vpack.c.bf16 %v556_v62, %v556_v62  ;;  %v438_v0 = vpop.f32.mrf.mxu0  ;;  %v469_v1 = vpop.f32.mrf.mxu1 }
 0x3db   :  { %v669_v27 = vpop.permute.xlu0 %668  ;;  %v720_v47 = vpop.permute.xlu1 %719 }
 0x3dc   :  { %1414 = vmatmul.msk.bf16.vlgmr.msrb.gmra.mxu1 %vm235_vm2, %v557_v63  ;;  %732 = vmatpush.bf16.msrb.mxu0 %v720_v47 }
 0x3dd   :  { %687 = vmatpush.bf16.msra.mxu1 %v669_v27 }
 0x3e0   :  { %733 = vmatpush.bf16.msrb.mxu0 %v718_v58  ;;  %786 = vrot.lane.b32.xlu0 %v779_v59, %s1722_s9 }
 0x3e1   :  { %921 = vrot.lane.b32.xlu1 %v1837_v31, %s1718_s29 }
 0x3e3   :  { %v744_v45 = vpop.permute.xlu0 %743 }
 0x3e4   :  { %753 = vmatpush.bf16.msrb.mxu2 %v744_v45 }
 0x3e8   :  { %754 = vmatpush.bf16.msrb.mxu2 %v742_v12 }
 0x3eb   :  { %v761_v46 = vpop.permute.xlu0 %760 }
 0x3ec   :  { %773 = vmatpush.bf16.msrb.mxu1 %v761_v46 }
 0x452   :  { %v551_v29 = vpop.f32.mrf.mxu0 }
 0x453   :  { %v552_v55 = vadd.f32 %v551_v29, %v529_v54 }
 0x459   :  { %v579_v5 = vpop.f32.mrf.mxu1 }
 0x45a   :  { %v580_v6 = vadd.f32 %v579_v5, %v565_v37  ;;  %v515_v7 = vpop.f32.mrf.mxu2  ;;  %v1474_v5 = vld [vmem:[#allocation7 + $0x38] sm:$0xf0] }
 0x45b   :  { %v516_v30 = vadd.f32 %v515_v7, %v501_v24  ;;  %v1500_v7 = vpop.permute.xlu0 %1499 }
 0x45c   :  { %vm583_vm9 = vcmp.gt.f32.partialorder %v580_v6, 0.0  ;;  %v584_v9 = vmul.f32 0.01, %v580_v6 }
 0x45e   :  { %v585_v10 = vsel %vm583_vm9, %v580_v6, %v584_v9  ;;  %v1952_v6 = vor.u32 %v1474_v5, %v1440_v4  ;;  %v1502_v9 = vunpack.i.h.bf16 %v1500_v7 }
 0x45f   :  { %v586_v8 = vpack.c.bf16 %v585_v10, %v585_v10  ;;  %v1501_v10 = vunpack.i.l.bf16 %v1500_v7 }
 0x460   :  { %974 = vrot.lane.b32.xlu0 %v1952_v6, %s1721_s6 }
 0x461   :  { %v581_v11 = vpop.f32.mrf.mxu1  ;;  %1415 = vmatmul.msk.bf16.vlgmr.msrb.gmra.mxu3 %vm235_vm2, %v586_v8  ;;  %v783_v8 = vpop.permute.xlu2 %782 }
 0x462   :  { %v517_v15 = vpop.f32.mrf.mxu2  ;;  %799 = vmatpush.bf16.msrb.mxu3 %v783_v8  ;;  %v1431_v11 = vld [vmem:[#allocation7 + $0x14] sm:$0xf] }
 0x463   :  { %v1472_v15 = vld [vmem:[#allocation7 + $0x18] sm:$0xf0] }
 0x464   :  { %v1961_v17 = vor.u32 %v1472_v15, %v1431_v11 }
 0x466   :  { %948 = vrot.lane.b32.xlu1 %v1961_v17, %s1721_s6 }
 0x468   :  { %1001 = vrot.lane.b32.xlu0 %v1857_v43, %s1718_s29 }
 0x470   :  { %811 = vrot.lane.b32.xlu0 %v1897_v23, %s1721_s6 }
 0x4e4   :  { %v605_v16 = vpop.f32.mrf.mxu3 }
 0x4e5   :  { %v606_v18 = vadd.f32 %v605_v16, %v495_v51  ;;  %v1427_v16 = vld [vmem:[#allocation7 + $0x4] sm:$0xf] }
 0x4e7   :  { %vm609_vm10 = vcmp.gt.f32.partialorder %v606_v18, 0.0  ;;  %v610_v19 = vmul.f32 0.01, %v606_v18 }
 0x4e9   :  { %v611_v20 = vsel %vm609_vm10, %v606_v18, %v610_v19  ;;  %v1471_v18 = vld [vmem:[#allocation7 + $0x8] sm:$0xf0] }
 0x4ea   :  { %v612_v21 = vpack.c.bf16 %v611_v20, %v611_v20  ;;  %v1966_v19 = vor.u32 %v1471_v18, %v1427_v16 }
 0x4ec   :  { %v607_v22 = vpop.f32.mrf.mxu3  ;;  %1416 = vmatmul.msk.bf16.vlgmr.msra.gmra.mxu0 %vm235_vm2, %v612_v21  ;;  %1419 = vmatmul.msk.bf16.vlgmr.msra.gmra.mxu3 %vm235_vm2, %v612_v21 }
 0x4ed   :  { %831 = vmatpush.msra.mxu0 %v1501_v10  ;;  %946 = vrot.lane.b32.xlu2 %v1966_v19, %s1721_s6 }
 0x4ef   :  { %832 = vmatpush.msra.mxu0 %v1502_v9 }
 0x4f5   :  { %1003 = vrot.lane.b32.xlu2 %v1852_v39, %s1718_s29 }
 0x4fd   :  { %1048 = vrot.lane.b32.xlu2 %v1893_v14, %s1718_s29  ;;  %v897_v14 = vpop.permute.xlu0 %896 }
 0x505   :  { %1065 = vrot.lane.b32.xlu2 %v1803_v3, %s1722_s9  ;;  %v920_v3 = vpop.permute.xlu2 %919 }
 0x50d   :  { %1024 = vrot.lane.b32.xlu2 %v1852_v39, %s1725_s1 }
 0x515   :  { %1504 = vrot.lane.b32.xlu2 %v1909_v34, %s1724_s13 }
 0x547   :  { %v947_v12 = vpop.permute.xlu2 %946 }
 0x54f   :  { %v1004_v47 = vpop.permute.xlu2 %1003 }
 0x569   :  { %v631_v33 = vpop.f32.mrf.mxu0 }
 0x56a   :  { %v632_v35 = vadd.f32 %v631_v33, %v516_v30 }
 0x56c   :  { %vm635_vm11 = vcmp.gt.f32.partialorder %v632_v35, 0.0  ;;  %v636_v36 = vmul.f32 0.01, %v632_v35 }
 0x56e   :  { %v637_v37 = vsel %vm635_vm11, %v632_v35, %v636_v36 }
 0x56f   :  { %v638_v38 = vpack.c.bf16 %v637_v37, %v637_v37  ;;  %v711_v40 = vpop.f32.mrf.mxu3  ;;  %v787_v37 = vpop.permute.xlu0 %786 }
 0x570   :  { %v715_v56 = vadd.f32 %v711_v40, %v552_v55  ;;  %v858_v40 = vpop.permute.xlu1 %857 }
 0x571   :  { %v633_v41 = vpop.f32.mrf.mxu0  ;;  %1417 = vmatmul.msk.bf16.vlgmr.msra.gmra.mxu2 %vm235_vm2, %v638_v38 }
 0x572   :  { %v740_v57 = vpack.c.bf16 %v715_v56, %v715_v56  ;;  %869 = vmatpush.bf16.msra.mxu2 %v1961_v17  ;;  %v1436_v41 = vld [vmem:[#allocation7 + $0x24] sm:$0xf] }
 0x576   :  { %870 = vmatpush.bf16.msra.mxu2 %v1966_v19 }
 0x577   :  { %v713_v44 = vpop.f32.mrf.mxu3  ;;  %v975_v38 = vpop.permute.xlu0 %974 }
 0x578   :  { %v1473_v44 = vld [vmem:[#allocation7 + $0x28] sm:$0xf0]  ;;  %v922_v46 = vpop.permute.xlu1 %921 }
 0x579   :  { %v1980_v45 = vor.u32 %v1473_v44, %v1436_v41 }
 0x57b   :  { %972 = vrot.lane.b32.xlu1 %v1980_v45, %s1721_s6  ;;  %1178 = vrot.lane.b32.xlu2 %v1980_v45, %s1718_s29 }
 0x583   :  { %1090 = vrot.lane.b32.xlu2 %v1835_v28, %s1722_s9 }
 0x58b   :  { %1230 = vrot.lane.b32.xlu2 %v1966_v19, %s1722_s9 }
 0x593   :  { %1259 = vrot.lane.b32.xlu2 %v1980_v45, %s1722_s9 }
 0x59b   :  { %1308 = vrot.lane.b32.xlu2 %v1857_v43, %s1726_s14 }
 0x5a3   :  { %1119 = vrot.lane.b32.xlu2 %v1897_v23, %s1724_s13 }
 0x5f4   :  { %v660_v13 = vpop.f32.mrf.mxu2 }
 0x5f5   :  { %v661_v48 = vadd.f32 %v660_v13, %v646_v26 }
 0x5f7   :  { %vm664_vm12 = vcmp.gt.f32.partialorder %v661_v48, 0.0  ;;  %v665_v50 = vmul.f32 0.01, %v661_v48 }
 0x5f9   :  { %v666_v51 = vsel %vm664_vm12, %v661_v48, %v665_v50  ;;  %v1002_v48 = vpop.permute.xlu0 %1001 }
 0x5fa   :  { %v667_v52 = vpack.c.bf16 %v666_v51, %v666_v51 }
 0x5fc   :  { %v662_v53 = vpop.f32.mrf.mxu2  ;;  %1418 = vmatmul.msk.bf16.vlgmr.msra.gmra.mxu1 %vm235_vm2, %v667_v52 }
 0x5fd   :  { %934 = vmatpush.bf16.msra.mxu1 %v922_v46 }
 0x601   :  { %935 = vmatpush.bf16.msra.mxu1 %v920_v3 }
 0x60c   :  { %1422 = vmatmul.msk.bf16.vlgmr.msrb.gmra.mxu1 %vm144_vm0, %v740_v57 }
 0x679   :  { %v689_v60 = vpop.f32.mrf.mxu1 }
 0x67a   :  { %v690_v61 = vadd.f32 %v689_v60, %v675_v49 }
 0x67c   :  { %vm693_vm13 = vcmp.gt.f32.partialorder %v690_v61, 0.0  ;;  %v694_v62 = vmul.f32 0.01, %v690_v61 }
 0x67e   :  { %v695_v63 = vsel %vm693_vm13, %v690_v61, %v694_v62 }
 0x67f   :  { %v716_v0 = vpack.c.bf16 %v695_v63, %v695_v63 }
 0x681   :  { %v691_v1 = vpop.f32.mrf.mxu1  ;;  %1420 = vmatmul.msk.bf16.vlgmr.msrb.gmra.mxu0 %vm235_vm2, %v716_v0  ;;  %1421 = vmatmul.msk.bf16.vlgmr.msrb.gmra.mxu2 %vm235_vm2, %v716_v0 }
 0x682   :  { %908 = vmatpush.bf16.msrb.mxu0 %v1952_v6  ;;  %991 = vmatpush.bf16.msrb.mxu2 %v975_v38  ;;  %v945_v1 = vld [vmem:[#allocation13 + $0x20] sm:$0xff] }
 0x683   :  { %979 = vrot.lane.b32.xlu1 %v945_v1, %s1721_s6  ;;  %1084 = vrot.lane.b32.xlu0 %v945_v1, %s1718_s29 }
 0x686   :  { %909 = vmatpush.bf16.msrb.mxu0 %v1980_v45  ;;  %v1089_v45 = vld [vmem:[#allocation13 + $0x28] sm:$0xff] }
 0x689   :  { %v775_v25 = vpop.f32.mrf.mxu1 }
 0x68b   :  { %1046 = vrot.lane.b32.xlu1 %v1902_v32, %s1718_s29  ;;  %1149 = vrot.lane.b32.xlu0 %v1966_v19, %s1718_s29 }
 0x691   :  { %v777_v2 = vpop.f32.mrf.mxu1 }
 0x693   :  { %1151 = vrot.lane.b32.xlu1 %v1961_v17, %s1718_s29  ;;  %1155 = vrot.lane.b32.xlu0 %v945_v1, %s1722_s9 }
 0x69b   :  { %1206 = vrot.lane.b32.xlu0 %v1837_v31, %s1722_s9  ;;  %1022 = vrot.lane.b32.xlu1 %v1857_v43, %s1725_s1  ;;  %v1049_v31 = vpop.permute.xlu2 %1048 }
 0x6a3   :  { %1180 = vrot.lane.b32.xlu1 %v1952_v6, %s1718_s29  ;;  %v1066_v11 = vpop.permute.xlu2 %1065  ;;  %1094 = vrot.lane.b32.xlu0 %v1089_v45, %s1721_s6 }
 0x6ab   :  { %1204 = vrot.lane.b32.xlu1 %v1855_v42, %s1722_s9  ;;  %v1025_v16 = vpop.permute.xlu2 %1024  ;;  %1236 = vrot.lane.b32.xlu0 %v1089_v45, %s1718_s29 }
 0x6ac   :  { %1037 = vmatpush.bf16.msrb.mxu1 %v1025_v16 }
 0x6b3   :  { %1232 = vrot.lane.b32.xlu1 %v1961_v17, %s1722_s9  ;;  %v1505_v28 = vpop.permute.xlu2 %1504  ;;  %1265 = vrot.lane.b32.xlu0 %v1089_v45, %s1722_s9 }
 0x6b4   :  { %v1507_v44 = vunpack.i.h.bf16 %v1505_v28  ;;  %v1506_v3 = vunpack.i.l.bf16 %v1505_v28 }
 0x6bb   :  { %1261 = vrot.lane.b32.xlu1 %v1952_v6, %s1722_s9  ;;  %v812_v6 = vpop.permute.xlu0 %811  ;;  %v1179_v19 = vpop.permute.xlu2 %1178  ;;  %1289 = vrot.lane.b32.xlu0 %v1852_v39, %s1722_s9 }
 0x6c3   :  { %1310 = vrot.lane.b32.xlu1 %v1852_v39, %s1726_s14  ;;  %v1091_v46 = vpop.permute.xlu2 %1090 }
 0x6cb   :  { %1287 = vrot.lane.b32.xlu1 %v1857_v43, %s1722_s9 }
 0x6fe   :  { %v735_v20 = vpop.f32.mrf.mxu0 }
 0x6ff   :  { %v739_v21 = vadd.f32 %v735_v20, %v715_v56  ;;  %v949_v56 = vpop.permute.xlu1 %948 }
 0x700   :  { %961 = vmatpush.bf16.msra.mxu3 %v949_v56 }
 0x701   :  { %v781_v22 = vpack.c.bf16 %v739_v21, %v739_v21  ;;  %1424 = vmatmul.msk.f32.vlgmr.msra.gmra.mxu0 %vm144_vm0, %v739_v21 }
 0x702   :  { %1013 = vmatpush.bf16.msra.mxu0 %v1004_v47 }
 0x703   :  { %1423 = vmatmul.msk.bf16.vlgmr.msrb.gmra.mxu3 %vm144_vm0, %v781_v22 }
 0x704   :  { %v756_v24 = vpop.f32.mrf.mxu2  ;;  %962 = vmatpush.bf16.msra.mxu3 %v947_v12  ;;  %v1085_v12 = vpop.permute.xlu0 %1084 }
 0x705   :  { %v776_v26 = vadd.f32 %v775_v25, %v756_v24 }
 0x706   :  { %v737_v27 = vpop.f32.mrf.mxu0  ;;  %1014 = vmatpush.bf16.msra.mxu0 %v1002_v48 }
 0x707   :  { %v780_v29 = vadd.f32 %v779_v59, %v776_v26  ;;  %v973_v0 = vpop.permute.xlu1 %972 }
 0x708   :  { %992 = vmatpush.bf16.msrb.mxu2 %v973_v0  ;;  %1058 = vmatpush.bf16.msrb.mxu3 %v1049_v31 }
 0x709   :  { %vm837_vm14 = vcmp.gt.f32.partialorder %v780_v29, 0.0  ;;  %v838_v30 = vmul.f32 0.01, %v780_v29 }
 0x70b   :  { %v839_v33 = vsel %vm837_vm14, %v780_v29, %v838_v30 }
 0x70c   :  { %v844_v35 = vpack.c.bf16 %v839_v33, %v839_v33  ;;  %v758_v36 = vpop.f32.mrf.mxu2 }
 0x70e   :  { %1433 = vmatmul.msk.bf16.vlgmr.msra.gmra.mxu2 %vm235_vm2, %v844_v35 }
 0x70f   :  { %1078 = vmatpush.bf16.msra.mxu2 %v1066_v11  ;;  %v980_v15 = vpop.permute.xlu1 %979 }
 0x717   :  { %v1047_v20 = vpop.permute.xlu1 %1046 }
 0x718   :  { %1059 = vmatpush.bf16.msrb.mxu3 %v1047_v20 }
 0x71f   :  { %v1152_v17 = vpop.permute.xlu1 %1151 }
 0x727   :  { %v1023_v33 = vpop.permute.xlu1 %1022 }
 0x728   :  { %1038 = vmatpush.bf16.msrb.mxu1 %v1023_v33 }
 0x77e   :  { %v834_v57 = vpop.f32.mrf.mxu0 }
 0x77f   :  { %v835_v27 = vadd.f32 %v834_v57, %v812_v6 }
 0x786   :  { %v801_v13 = vpop.f32.mrf.mxu3 }
 0x787   :  { %v802_v25 = vadd.f32 %v801_v13, %v787_v37  ;;  %v1150_v13 = vpop.permute.xlu0 %1149 }
 0x78e   :  { %v803_v49 = vpop.f32.mrf.mxu3 }
 0x78f   :  { %v1156_v47 = vpop.permute.xlu0 %1155 }
 0x791   :  { %v872_v50 = vpop.f32.mrf.mxu2 }
 0x792   :  { %v873_v51 = vadd.f32 %v872_v50, %v858_v40 }
 0x794   :  { %vm876_vm15 = vcmp.gt.f32.partialorder %v873_v51, 0.0  ;;  %v877_v52 = vmul.f32 0.01, %v873_v51 }
 0x796   :  { %v878_v53 = vsel %vm876_vm15, %v873_v51, %v877_v52 }
 0x797   :  { %v883_v54 = vpack.c.bf16 %v878_v53, %v878_v53  ;;  %v1207_v43 = vpop.permute.xlu0 %1206 }
 0x799   :  { %v874_v55 = vpop.f32.mrf.mxu2  ;;  %1442 = vmatmul.msk.bf16.vlgmr.msrb.gmra.mxu0 %vm235_vm2, %v883_v54 }
 0x79a   :  { %1107 = vmatpush.bf16.msrb.mxu0 %v1091_v46 }
 0x816   :  { %v911_v58 = vpop.f32.mrf.mxu0 }
 0x817   :  { %v912_v59 = vadd.f32 %v911_v58, %v897_v14  ;;  %v1181_v58 = vpop.permute.xlu1 %1180 }
 0x819   :  { %vm915_vm1 = vcmp.gt.f32.partialorder %v912_v59, 0.0  ;;  %v916_v60 = vmul.f32 0.01, %v912_v59 }
 0x81b   :  { %v917_v61 = vsel %vm915_vm1, %v912_v59, %v916_v60  ;;  %v1095_v59 = vpop.permute.xlu0 %1094 }
 0x81c   :  { %v918_v62 = vpack.c.bf16 %v917_v61, %v917_v61 }
 0x81e   :  { %v913_v63 = vpop.f32.mrf.mxu0  ;;  %1443 = vmatmul.msk.bf16.vlgmr.msra.gmra.mxu1 %vm235_vm2, %v918_v62  ;;  %1446 = vmatmul.msk.bf16.vlgmr.msra.gmra.mxu0 %vm235_vm2, %v918_v62  ;;  %v1231_v62 = vpop.permute.xlu2 %1230 }
 0x81f   :  { %1139 = vmatpush.msra.mxu1 %v1506_v3  ;;  %v1205_v60 = vpop.permute.xlu1 %1204 }
 0x821   :  { %1140 = vmatpush.msra.mxu1 %v1507_v44 }
 0x823   :  { %v1237_v61 = vpop.permute.xlu0 %1236 }
 0x827   :  { %v1233_v39 = vpop.permute.xlu1 %1232 }
 0x828   :  { %1248 = vmatpush.bf16.msra.mxu0 %v1233_v39 }
 0x82c   :  { %1249 = vmatpush.bf16.msra.mxu0 %v1231_v62 }
 0x89b   :  { %v937_v2 = vpop.f32.mrf.mxu1  ;;  %v1016_v4 = vpop.f32.mrf.mxu0 }
 0x89c   :  { %v938_v5 = vadd.f32 %v937_v2, %v802_v25  ;;  %v1020_v29 = vadd.f32 %v1016_v4, %v835_v27  ;;  %v1262_v2 = vpop.permute.xlu1 %1261 }
 0x89e   :  { %vm941_vm3 = vcmp.gt.f32.partialorder %v938_v5, 0.0  ;;  %v942_v7 = vmul.f32 0.01, %v938_v5  ;;  %v1045_v30 = vpack.c.bf16 %v1020_v29, %v1020_v29 }
 0x8a0   :  { %v943_v9 = vsel %vm941_vm3, %v938_v5, %v942_v7  ;;  %v1260_v5 = vpop.permute.xlu2 %1259 }
 0x8a1   :  { %v944_v10 = vpack.c.bf16 %v943_v9, %v943_v9 }
 0x8a3   :  { %v939_v32 = vpop.f32.mrf.mxu1  ;;  %1444 = vmatmul.msk.bf16.vlgmr.msra.gmra.mxu3 %vm235_vm2, %v944_v10  ;;  %v1018_v8 = vpop.f32.mrf.mxu0 }
 0x8a4   :  { %1167 = vmatpush.bf16.msra.mxu3 %v1152_v17  ;;  %v1311_v9 = vpop.permute.xlu1 %1310 }
 0x8a8   :  { %1168 = vmatpush.bf16.msra.mxu3 %v1150_v13  ;;  %v1309_v8 = vpop.permute.xlu2 %1308 }
 0x8ac   :  { %v1288_v16 = vpop.permute.xlu1 %1287 }
 0x8b0   :  { %v1120_v13 = vpop.permute.xlu2 %1119 }
 0x926   :  { %v964_v18 = vpop.f32.mrf.mxu3 }
 0x927   :  { %v965_v21 = vadd.f32 %v964_v18, %v945_v1  ;;  %v1266_v1 = vpop.permute.xlu0 %1265 }
 0x929   :  { %vm968_vm4 = vcmp.gt.f32.partialorder %v965_v21, 0.0  ;;  %v969_v22 = vmul.f32 0.01, %v965_v21 }
 0x92b   :  { %v970_v42 = vsel %vm968_vm4, %v965_v21, %v969_v22 }
 0x92c   :  { %v971_v24 = vpack.c.bf16 %v970_v42, %v970_v42 }
 0x92e   :  { %v966_v26 = vpop.f32.mrf.mxu3  ;;  %1445 = vmatmul.msk.bf16.vlgmr.msrb.gmra.mxu2 %vm235_vm2, %v971_v24 }
 0x92f   :  { %1219 = vmatpush.bf16.msrb.mxu2 %v1207_v43  ;;  %v1290_v4 = vpop.permute.xlu0 %1289 }
 0x933   :  { %1220 = vmatpush.bf16.msrb.mxu2 %v1205_v60 }
 0x93e   :  { %1449 = vmatmul.msk.bf16.vlgmr.msra.gmra.mxu2 %vm144_vm0, %v1045_v30 }
 0x93f   :  { %1323 = vmatpush.bf16.msra.mxu2 %v1311_v9 }
 0x943   :  { %1324 = vmatpush.bf16.msra.mxu2 %v1309_v8 }
 0x9b1   :  { %v994_v35 = vpop.f32.mrf.mxu2 }
 0x9b2   :  { %v995_v36 = vadd.f32 %v994_v35, %v980_v15 }
 0x9b4   :  { %vm998_vm5 = vcmp.gt.f32.partialorder %v995_v36, 0.0  ;;  %v999_v14 = vmul.f32 0.01, %v995_v36 }
 0x9b6   :  { %v1000_v37 = vsel %vm998_vm5, %v995_v36, %v999_v14 }
 0x9b7   :  { %v1021_v38 = vpack.c.bf16 %v1000_v37, %v1000_v37 }
 0x9b9   :  { %v996_v40 = vpop.f32.mrf.mxu2  ;;  %1447 = vmatmul.msk.bf16.vlgmr.msrb.gmra.mxu1 %vm235_vm2, %v1021_v38  ;;  %1448 = vmatmul.msk.bf16.vlgmr.msrb.gmra.mxu3 %vm235_vm2, %v1021_v38 }
 0x9ba   :  { %1193 = vmatpush.bf16.msrb.mxu1 %v1181_v58  ;;  %1277 = vmatpush.bf16.msrb.mxu3 %v1262_v2 }
 0x9be   :  { %1194 = vmatpush.bf16.msrb.mxu1 %v1179_v19  ;;  %1278 = vmatpush.bf16.msrb.mxu3 %v1260_v5 }
 0x9c1   :  { %v1080_v41 = vpop.f32.mrf.mxu2 }
 0x9c9   :  { %v1082_v34 = vpop.f32.mrf.mxu2 }
 0xa36   :  { %v1040_v23 = vpop.f32.mrf.mxu1 }
 0xa37   :  { %v1044_v48 = vadd.f32 %v1040_v23, %v1020_v29 }
 0xa39   :  { %v1088_v49 = vpack.c.bf16 %v1044_v48, %v1044_v48  ;;  %1451 = vmatmul.msk.f32.vlgmr.msra.gmra.mxu1 %vm144_vm0, %v1044_v48 }
 0xa3a   :  { %1299 = vmatpush.bf16.msra.mxu1 %v1290_v4 }
 0xa3b   :  { %1450 = vmatmul.msk.bf16.vlgmr.msrb.gmra.mxu0 %vm144_vm0, %v1088_v49 }
 0xa3c   :  { %v1061_v50 = vpop.f32.mrf.mxu3 }
 0xa3d   :  { %v1081_v51 = vadd.f32 %v1080_v41, %v1061_v50 }
 0xa3e   :  { %v1042_v52 = vpop.f32.mrf.mxu1  ;;  %1300 = vmatpush.bf16.msra.mxu1 %v1288_v16 }
 0xa3f   :  { %v1087_v53 = vadd.f32 %v1085_v12, %v1081_v51 }
 0xa41   :  { %vm1145_vm6 = vcmp.gt.f32.partialorder %v1087_v53, 0.0  ;;  %v1146_v54 = vmul.f32 0.01, %v1087_v53 }
 0xa43   :  { %v1147_v55 = vsel %vm1145_vm6, %v1087_v53, %v1146_v54 }
 0xa44   :  { %v1148_v56 = vpack.c.bf16 %v1147_v55, %v1147_v55  ;;  %v1063_v57 = vpop.f32.mrf.mxu3 }
 0xa46   :  { %1452 = vmatmul.msk.bf16.vlgmr.msra.gmra.mxu3 %vm235_vm2, %v1148_v56 }
 0xab6   :  { %v1142_v18 = vpop.f32.mrf.mxu1 }
 0xab8   :  { %v1109_v63 = vpop.f32.mrf.mxu0 }
 0xab9   :  { %v1110_v0 = vadd.f32 %v1109_v63, %v1095_v59 }
 0xac0   :  { %v1111_v25 = vpop.f32.mrf.mxu0 }
 0xac9   :  { %v1170_v7 = vpop.f32.mrf.mxu3 }
 0xaca   :  { %v1171_v10 = vadd.f32 %v1170_v7, %v1156_v47 }
 0xacc   :  { %vm1174_vm7 = vcmp.gt.f32.partialorder %v1171_v10, 0.0  ;;  %v1175_v32 = vmul.f32 0.01, %v1171_v10 }
 0xace   :  { %v1176_v31 = vsel %vm1174_vm7, %v1171_v10, %v1175_v32 }
 0xacf   :  { %v1177_v11 = vpack.c.bf16 %v1176_v31, %v1176_v31 }
 0xad1   :  { %v1172_v15 = vpop.f32.mrf.mxu3  ;;  %1453 = vmatmul.msk.bf16.vlgmr.msrb.gmra.mxu1 %vm235_vm2, %v1177_v11 }
 0xb4e   :  { %v1196_v20 = vpop.f32.mrf.mxu1 }
 0xb4f   :  { %v1197_v21 = vadd.f32 %v1196_v20, %v1089_v45  ;;  %v1143_v45 = vadd.f32 %v1142_v18, %v1120_v13 }
 0xb51   :  { %vm1200_vm8 = vcmp.gt.f32.partialorder %v1197_v21, 0.0  ;;  %v1201_v22 = vmul.f32 0.01, %v1197_v21 }
 0xb53   :  { %v1202_v42 = vsel %vm1200_vm8, %v1197_v21, %v1201_v22 }
 0xb54   :  { %v1203_v24 = vpack.c.bf16 %v1202_v42, %v1202_v42 }
 0xb56   :  { %v1198_v26 = vpop.f32.mrf.mxu1  ;;  %1454 = vmatmul.msk.bf16.vlgmr.msrb.gmra.mxu2 %vm235_vm2, %v1203_v24  ;;  %1457 = vmatmul.msk.bf16.vlgmr.msra.gmra.mxu1 %vm235_vm2, %v1203_v24 }
 0xbd3   :  { %v1302_v17 = vpop.f32.mrf.mxu1 }
 0xbd4   :  { %v1306_v47 = vadd.f32 %v1302_v17, %v1143_v45 }
 0xbd9   :  { %v1222_v6 = vpop.f32.mrf.mxu2 }
 0xbda   :  { %v1223_v27 = vadd.f32 %v1222_v6, %v1110_v0 }
 0xbdb   :  { %v1304_v29 = vpop.f32.mrf.mxu1 }
 0xbdc   :  { %vm1226_vm9 = vcmp.gt.f32.partialorder %v1223_v27, 0.0  ;;  %v1227_v30 = vmul.f32 0.01, %v1223_v27 }
 0xbde   :  { %v1228_v33 = vsel %vm1226_vm9, %v1223_v27, %v1227_v30 }
 0xbdf   :  { %v1229_v35 = vpack.c.bf16 %v1228_v33, %v1228_v33 }
 0xbe1   :  { %v1224_v36 = vpop.f32.mrf.mxu2  ;;  %1455 = vmatmul.msk.bf16.vlgmr.msra.gmra.mxu0 %vm235_vm2, %v1229_v35 }
 0xc5e   :  { %v1251_v14 = vpop.f32.mrf.mxu0 }
 0xc5f   :  { %v1252_v37 = vadd.f32 %v1251_v14, %v1237_v61 }
 0xc61   :  { %vm1255_vm10 = vcmp.gt.f32.partialorder %v1252_v37, 0.0  ;;  %v1256_v38 = vmul.f32 0.01, %v1252_v37 }
 0xc63   :  { %v1257_v40 = vsel %vm1255_vm10, %v1252_v37, %v1256_v38 }
 0xc64   :  { %v1258_v41 = vpack.c.bf16 %v1257_v40, %v1257_v40 }
 0xc66   :  { %v1253_v34 = vpop.f32.mrf.mxu0  ;;  %1456 = vmatmul.msk.bf16.vlgmr.msrb.gmra.mxu3 %vm235_vm2, %v1258_v41 }
 0xce9   :  { %v1280_v28 = vpop.f32.mrf.mxu3 }
 0xcea   :  { %v1281_v44 = vadd.f32 %v1280_v28, %v1266_v1 }
 0xcec   :  { %vm1284_vm11 = vcmp.gt.f32.partialorder %v1281_v44, 0.0  ;;  %v1285_v3 = vmul.f32 0.01, %v1281_v44 }
 0xcee   :  { %v1286_v19 = vsel %vm1284_vm11, %v1281_v44, %v1285_v3 }
 0xcef   :  { %v1307_v46 = vpack.c.bf16 %v1286_v19, %v1286_v19 }
 0xcf1   :  { %v1282_v12 = vpop.f32.mrf.mxu3  ;;  %1458 = vmatmul.msk.bf16.vlgmr.msra.gmra.mxu2 %vm235_vm2, %v1307_v46 }
 0xd74   :  { %v1326_v43 = vpop.f32.mrf.mxu2 }
 0xd75   :  { %v1330_v23 = vadd.f32 %v1326_v43, %v1306_v47 }
 0xd77   :  { %1331 = vst.msk [vmem:[#allocation14] sm:$0xff] %vm144_vm0, %v1330_v23 }
 0xd78   :  { %1342 = dma.vmem_to_hbm [thread:$0]  %s1338_s15, 128, %s1340_s18, [#allocation4]  }
 0xd7c   :  { %v1328_v48 = vpop.f32.mrf.mxu2 }
 0xd7d   :  { %1708 = dma.done.wait [#allocation4], 128  }
 0xd7e   :  { %1709 = vsyncadd [#allocation4], 4294967168 }
 0xd7f   :  { %1347 = vsyncpa [#allocation3], 1 }
 0xd80   :  { %1348 = vsyncpa [#allocation6], 1 }
 0xd81   :  { %1349 = vsyncpa [#allocation9], 1 }
 0xd82   :  { %1350 = vsyncpa [#allocation12], 1 }
 0xd83   :  { %1351 = vsyncpa [#allocation4], 1 }

</bundles_post_ra>
